<compile_context>
chip_gen: v7x
topology: tpu7x:2x2x1
jax: 0.10.0
libtpu: 0.0.40
codegen_flags: <defaults>
</compile_context>

<pallas_src>
import jax
import jax.numpy as jnp
from jax import lax
from jax.experimental import pallas as pl
from jax.experimental.pallas import tpu as pltpu


def convnormpool_kernel(x_ref,
                        w1_ref, w2_ref, w3_ref,
                        g1_ref, bt1_ref, g2_ref, bt2_ref, g3_ref, bt3_ref,
                        mask_ref,
                        out_ref,
                        pad_ref):
    N, Lp, Cp = x_ref.shape            # Lp = L1p + K - 1 (sublane-padded input len)
    Hp = w1_ref.shape[1]
    K = w1_ref.shape[0] // Cp          # taps (weights are stacked tap-major)
    L = out_ref.shape[1]               # true output length (== input L)
    L1 = L - K + 1                     # 'valid' conv output length
    L1p = Lp - K + 1                   # sublane-aligned conv output length
    M = N * L1p                        # batch folded into the matmul M dim
    needs_mask = (L1p != L1)           # static: only mask when pad rows exist
    inv_cnt = 1.0 / float(N * L1)      # BN count uses only the valid rows
    eps = 1e-5                         # BatchNorm1d default eps

    mask = mask_ref[...] if needs_mask else None   # (M, 1) f32, hoisted once

    def conv_layer(window, w_ref, c_in):
        # Stack the K taps along the contraction dim -> one deep MXU matmul
        # per layer. window(k) -> (N, L1p, c_in) slice for tap k.
        xs = jnp.concatenate([window(k) for k in range(K)], axis=-1)
        # (N, L1p, K*c_in) -> (M, K*c_in) is free: L1p is sublane-aligned.
        return jnp.dot(xs.reshape(M, K * c_in), w_ref[...],
                       preferred_element_type=jnp.float32)          # (M, Hp) f32

    def bn_swish(y, g_ref, bt_ref):
        # Training-mode BatchNorm1d (biased variance) fused with Swish.
        # One-pass sum / sum-of-squares in f32 (fine for ~unit-scale acts).
        ym = y * mask if needs_mask else y        # zero the sublane-pad rows
        s = jnp.sum(ym, axis=0, keepdims=True)                       # (1, Hp)
        sq = jnp.sum(ym * ym, axis=0, keepdims=True)                 # (1, Hp)
        mean = s * inv_cnt
        var = sq * inv_cnt - mean * mean
        inv = lax.rsqrt(var + eps)
        scale = inv * g_ref[...]                                     # (1, Hp)
        shift = bt_ref[...] - mean * scale                           # (1, Hp)
        z = y * scale + shift                                        # single FMA
        return z * jax.nn.sigmoid(z)

    def write_valid(y):
        # Store the L1 valid rows of each batch into the causal-pad slab; the
        # K-1 leading zeros and the sublane-pad tail were zeroed once up front.
        pad_ref[:, pl.ds(K - 1, L1), :] = (
            y.reshape(N, L1p, Hp)[:, :L1, :].astype(pad_ref.dtype))

    # Zero the causal-pad scratch once; only the valid middle rows get rewritten.
    pad_ref[...] = jnp.zeros_like(pad_ref)

    # ---- layer 1: Conv1d('valid') -> BN -> Swish -----------------------------
    conv1 = conv_layer(lambda k: x_ref[:, pl.ds(k, L1p), :], w1_ref, Cp)
    x1 = bn_swish(conv1, g1_ref, bt1_ref)

    # ---- layer 2: causal pad -> Conv1d -> BN -> Swish -------------------------
    write_valid(x1)
    conv2 = conv_layer(lambda k: pad_ref[:, pl.ds(k, L1p), :], w2_ref, Hp)
    x2 = bn_swish(conv2, g2_ref, bt2_ref)

    # ---- layer 3: causal pad -> Conv1d, skip with conv1 -> BN -> Swish --------
    write_valid(x2)
    conv3 = conv_layer(lambda k: pad_ref[:, pl.ds(k, L1p), :], w3_ref, Hp)
    x3 = bn_swish(conv1 + conv3, g3_ref, bt3_ref)

    # ---- final causal left-pad: pure data movement, direct stores -------------
    if K > 1:
        out_ref[:, pl.ds(0, K - 1), :] = jnp.zeros((N, K - 1, Hp), out_ref.dtype)
    out_ref[:, pl.ds(K - 1, L1), :] = (
        x3.reshape(N, L1p, Hp)[:, :L1, :].astype(out_ref.dtype))


def _ceil_to(v, m):
    return (v + m - 1) // m * m


def conv_norm_pool_forward(x_ncl, params, *, compute_dtype=jnp.float32,
                           lane_pad=128):
    """x_ncl: (N, C_in, L) float32, PyTorch layout. Returns (N, H, L) float32.

    compute_dtype=jnp.bfloat16 halves matmul-input / pad-scratch bytes and ~2x
    MXU throughput (accumulation and BN stats stay f32); kept f32 by default so
    the 2e-3 demo tolerance is guaranteed without re-validation.
    """
    N, C_in, L = x_ncl.shape
    H, _, K = params["w1"].shape
    assert L >= K, "need L >= kernel_size"
    L1 = L - K + 1

    sub = 8 * (4 // jnp.dtype(compute_dtype).itemsize)   # 8 (f32) / 16 (bf16)
    L1p = _ceil_to(L1, sub)            # sublane-aligned conv output length
    Lp = L1p + K - 1                   # padded slab length (>= L)
    Cp = _ceil_to(C_in, lane_pad)      # lane-dense channel widths
    Hp = _ceil_to(H, lane_pad)
    M = N * L1p

    # NCL -> NLC so channels sit on TPU lanes; zero-pad channels and length.
    x_nlc = jnp.transpose(x_ncl, (0, 2, 1)).astype(compute_dtype)
    x_nlc = jnp.pad(x_nlc, ((0, 0), (0, Lp - L), (0, Cp - C_in)))

    def prep_w(w, c_in, c_in_p):
        # (H, C_in, K) -> (K*c_in_p, Hp), taps stacked along the contraction dim
        # in the same order as the kernel's lane-concatenated windows.
        wt = jnp.transpose(w, (2, 1, 0)).astype(compute_dtype)       # (K, C_in, H)
        wt = jnp.pad(wt, ((0, 0), (0, c_in_p - c_in), (0, Hp - H)))
        return wt.reshape(K * c_in_p, Hp)

    def prep_v(v):                     # (H,) -> (1, Hp); zero pad keeps padded
        return jnp.pad(v.astype(jnp.float32).reshape(1, -1),         # channels 0
                       ((0, 0), (0, Hp - H)))

    # Row-validity mask for the sublane-pad rows (t >= L1 within each batch).
    mask = jnp.tile((jnp.arange(L1p) < L1).astype(jnp.float32), N).reshape(M, 1)

    # NOTE: conv biases b1/b2/b3 are intentionally not passed: every conv output
    # feeds a training-mode BatchNorm whose mean subtraction cancels any
    # per-channel constant offset exactly (including through the skip).
    args = [
        x_nlc,
        prep_w(params["w1"], C_in, Cp),
        prep_w(params["w2"], H, Hp),
        prep_w(params["w3"], H, Hp),
        prep_v(params["g1"]), prep_v(params["beta1"]),
        prep_v(params["g2"]), prep_v(params["beta2"]),
        prep_v(params["g3"]), prep_v(params["beta3"]),
        mask,
    ]

    # VMEM budget: inputs + pad scratch + output + live stacked operands/temps.
    cd_bytes = jnp.dtype(compute_dtype).itemsize
    in_bytes = sum(int(a.size) * a.dtype.itemsize for a in args)
    est = (in_bytes
           + N * Lp * Hp * cd_bytes                      # causal-pad scratch
           + N * L * Hp * 4                              # output slab
           + 2 * M * K * max(Cp, Hp) * cd_bytes          # stacked conv operands
           + 8 * M * Hp * 4)                             # conv outs / BN temps
    # Cap at ~80% of physical VMEM for THIS generation (≈102 MiB on v5e/v6e,
    # ≈51 MiB on v7x) instead of a blanket 64 MiB cap.
    try:
        vmem_cap = int(pltpu.get_tpu_info().vmem_capacity_bytes)
    except Exception:
        vmem_cap = 128 << 20
    vmem_limit = int(min(int(vmem_cap * 0.8), max(32 << 20, 2 * est)))

    out_nlc = pl.pallas_call(
        convnormpool_kernel,
        out_shape=jax.ShapeDtypeStruct((N, L, Hp), jnp.float32),
        in_specs=[pl.BlockSpec(memory_space=pltpu.MemorySpace.VMEM)] * len(args),
        out_specs=pl.BlockSpec(memory_space=pltpu.MemorySpace.VMEM),
        scratch_shapes=[pltpu.VMEM((N, Lp, Hp), compute_dtype)],
        compiler_params=pltpu.CompilerParams(vmem_limit_bytes=vmem_limit),
    )(*args)

    return jnp.transpose(out_nlc[:, :, :H], (0, 2, 1))


# ---------------- pure-JAX reference (mirrors the PyTorch forward) ----------------
def _ref_forward(x, p, K):
    def conv1d(x, w, b):  # x (N,C,L), w (O,C,K)
        y = lax.conv_general_dilated(x, w, (1,), "VALID",
                                     dimension_numbers=("NCH", "OIH", "NCH"))
        return y + b[None, :, None]

    def bn(x, g, bt):
        mean = jnp.mean(x, axis=(0, 2), keepdims=True)
        var = jnp.mean((x - mean) ** 2, axis=(0, 2), keepdims=True)
        return (x - mean) / jnp.sqrt(var + 1e-5) * g[None, :, None] + bt[None, :, None]

    def swish(x):
        return x * jax.nn.sigmoid(x)

    def padl(x):
        return jnp.pad(x, ((0, 0), (0, 0), (K - 1, 0)))

    conv1 = conv1d(x, p["w1"], p["b1"])
    h = padl(swish(bn(conv1, p["g1"], p["beta1"])))
    h = padl(swish(bn(conv1d(h, p["w2"], p["b2"]), p["g2"], p["beta2"])))
    conv3 = conv1d(h, p["w3"], p["b3"])
    return padl(swish(bn(conv1 + conv3, p["g3"], p["beta3"])))


if __name__ == "__main__":
    N, C_IN, H, K, L = 2, 4, 8, 3, 16

    key = jax.random.PRNGKey(0)
    ks = jax.random.split(key, 16)
    params = {
        "w1": 0.2 * jax.random.normal(ks[0], (H, C_IN, K), jnp.float32),
        "b1": 0.1 * jax.random.normal(ks[1], (H,), jnp.float32),
        "g1": 1.0 + 0.1 * jax.random.normal(ks[2], (H,), jnp.float32),
        "beta1": 0.1 * jax.random.normal(ks[3], (H,), jnp.float32),
        "w2": 0.2 * jax.random.normal(ks[4], (H, H, K), jnp.float32),
        "b2": 0.1 * jax.random.normal(ks[5], (H,), jnp.float32),
        "g2": 1.0 + 0.1 * jax.random.normal(ks[6], (H,), jnp.float32),
        "beta2": 0.1 * jax.random.normal(ks[7], (H,), jnp.float32),
        "w3": 0.2 * jax.random.normal(ks[8], (H, H, K), jnp.float32),
        "b3": 0.1 * jax.random.normal(ks[9], (H,), jnp.float32),
        "g3": 1.0 + 0.1 * jax.random.normal(ks[10], (H,), jnp.float32),
        "beta3": 0.1 * jax.random.normal(ks[11], (H,), jnp.float32),
    }
    x = jax.random.normal(ks[12], (N, C_IN, L), jnp.float32)

    out = conv_norm_pool_forward(x, params)
    out = jax.block_until_ready(out)

    ref = jax.block_until_ready(_ref_forward(x, params, K))
    assert out.shape == (N, H, L), out.shape
    assert jnp.allclose(out, ref, rtol=2e-3, atol=2e-3), \
        float(jnp.max(jnp.abs(out - ref)))

    print("KERNEL_OK")
</pallas_src>

<mosaic_0001>
module attributes {stable_mosaic.version = 11 : i64} {
  func.func @convnormpool_kernel(%arg0: memref<2x18x128xf32, #tpu.memory_space<vmem>>, %arg1: memref<384x128xf32, #tpu.memory_space<vmem>>, %arg2: memref<384x128xf32, #tpu.memory_space<vmem>>, %arg3: memref<384x128xf32, #tpu.memory_space<vmem>>, %arg4: memref<1x128xf32, #tpu.memory_space<vmem>>, %arg5: memref<1x128xf32, #tpu.memory_space<vmem>>, %arg6: memref<1x128xf32, #tpu.memory_space<vmem>>, %arg7: memref<1x128xf32, #tpu.memory_space<vmem>>, %arg8: memref<1x128xf32, #tpu.memory_space<vmem>>, %arg9: memref<1x128xf32, #tpu.memory_space<vmem>>, %arg10: memref<32x1xf32, #tpu.memory_space<vmem>>, %arg11: memref<2x16x128xf32, #tpu.memory_space<vmem>>, %arg12: memref<2x18x128xf32, #tpu.memory_space<vmem>>) attributes {dimension_semantics = [], scalar_prefetch = 0 : i64, scratch_operands = 1 : i64, tpu.core_type = #tpu.core_type<tc>} {
    %c0 = arith.constant 0 : index
    %c0_0 = arith.constant 0 : index
    %0 = vector.load %arg10[%c0, %c0_0] : memref<32x1xf32, #tpu.memory_space<vmem>>, vector<32x1xf32>
    %cst = arith.constant 0.000000e+00 : f32
    %1 = vector.broadcast %cst : f32 to vector<2x18x128xf32>
    %c0_1 = arith.constant 0 : index
    %c0_2 = arith.constant 0 : index
    %c0_3 = arith.constant 0 : index
    %2 = vector.load %arg12[%c0_1, %c0_2, %c0_3] : memref<2x18x128xf32, #tpu.memory_space<vmem>>, vector<2x18x128xf32>
    tpu.vector_store %arg12[%c0_1, %c0_2, %c0_3], %1 {strides = array<i32>} : memref<2x18x128xf32, #tpu.memory_space<vmem>>, vector<2x18x128xf32>,
    %c0_4 = arith.constant 0 : index
    %c0_5 = arith.constant 0 : index
    %c0_6 = arith.constant 0 : index
    %3 = vector.load %arg0[%c0_4, %c0_5, %c0_6] : memref<2x18x128xf32, #tpu.memory_space<vmem>>, vector<2x16x128xf32>
    %c0_7 = arith.constant 0 : index
    %c1 = arith.constant 1 : index
    %c0_8 = arith.constant 0 : index
    %4 = vector.load %arg0[%c0_7, %c1, %c0_8] : memref<2x18x128xf32, #tpu.memory_space<vmem>>, vector<2x16x128xf32>
    %c0_9 = arith.constant 0 : index
    %c2 = arith.constant 2 : index
    %c0_10 = arith.constant 0 : index
    %5 = vector.load %arg0[%c0_9, %c2, %c0_10] : memref<2x18x128xf32, #tpu.memory_space<vmem>>, vector<2x16x128xf32>
    %6 = tpu.concatenate %3, %4, %5 in 2 : vector<2x16x128xf32>, vector<2x16x128xf32>, vector<2x16x128xf32> -> vector<2x16x384xf32>
    %7 = vector.shape_cast %6 : vector<2x16x384xf32> to vector<32x384xf32>
    %c0_11 = arith.constant 0 : index
    %c0_12 = arith.constant 0 : index
    %8 = vector.load %arg1[%c0_11, %c0_12] : memref<384x128xf32, #tpu.memory_space<vmem>>, vector<384x128xf32>
    %cst_13 = arith.constant dense<0.000000e+00> : vector<32x128xf32>
    %9 = tpu.matmul %7, %8, %cst_13 {dimension_numbers = #tpu.dot_dimension_numbers<[1], [0], [0], [1], [0, 0, 1, 1], [], []>} : vector<32x384xf32>, vector<384x128xf32>, vector<32x128xf32> -> vector<32x128xf32>
    %10 = vector.broadcast %0 : vector<32x1xf32> to vector<32x128xf32>
    %11 = arith.mulf %9, %10 : vector<32x128xf32>
    %cst_14 = arith.constant dense<0.000000e+00> : vector<128xf32>
    %12 = vector.multi_reduction <add>, %11, %cst_14 [0] : vector<32x128xf32> to vector<128xf32>
    %13 = vector.shape_cast %12 : vector<128xf32> to vector<1x128xf32>
    %14 = arith.mulf %11, %11 : vector<32x128xf32>
    %cst_15 = arith.constant dense<0.000000e+00> : vector<128xf32>
    %15 = vector.multi_reduction <add>, %14, %cst_15 [0] : vector<32x128xf32> to vector<128xf32>
    %16 = vector.shape_cast %15 : vector<128xf32> to vector<1x128xf32>
    %cst_16 = arith.constant 0.0357142873 : f32
    %17 = vector.broadcast %cst_16 : f32 to vector<1x128xf32>
    %18 = arith.mulf %13, %17 : vector<1x128xf32>
    %cst_17 = arith.constant 0.0357142873 : f32
    %19 = vector.broadcast %cst_17 : f32 to vector<1x128xf32>
    %20 = arith.mulf %16, %19 : vector<1x128xf32>
    %21 = arith.mulf %18, %18 : vector<1x128xf32>
    %22 = arith.subf %20, %21 : vector<1x128xf32>
    %cst_18 = arith.constant 9.99999974E-6 : f32
    %23 = vector.broadcast %cst_18 : f32 to vector<1x128xf32>
    %24 = arith.addf %22, %23 : vector<1x128xf32>
    %25 = math.rsqrt %24 : vector<1x128xf32>
    %c0_19 = arith.constant 0 : index
    %c0_20 = arith.constant 0 : index
    %26 = vector.load %arg4[%c0_19, %c0_20] : memref<1x128xf32, #tpu.memory_space<vmem>>, vector<1x128xf32>
    %27 = arith.mulf %25, %26 : vector<1x128xf32>
    %c0_21 = arith.constant 0 : index
    %c0_22 = arith.constant 0 : index
    %28 = vector.load %arg5[%c0_21, %c0_22] : memref<1x128xf32, #tpu.memory_space<vmem>>, vector<1x128xf32>
    %29 = arith.mulf %18, %27 : vector<1x128xf32>
    %30 = arith.subf %28, %29 : vector<1x128xf32>
    %31 = vector.broadcast %27 : vector<1x128xf32> to vector<32x128xf32>
    %32 = arith.mulf %9, %31 : vector<32x128xf32>
    %33 = vector.broadcast %30 : vector<1x128xf32> to vector<32x128xf32>
    %34 = arith.addf %32, %33 : vector<32x128xf32>
    %35 = arith.negf %34 : vector<32x128xf32>
    %36 = math.exp %35 : vector<32x128xf32>
    %cst_23 = arith.constant 1.000000e+00 : f32
    %37 = vector.broadcast %cst_23 : f32 to vector<32x128xf32>
    %38 = arith.addf %37, %36 : vector<32x128xf32>
    %39 = arith.divf %37, %38 : vector<32x128xf32>
    %40 = arith.mulf %34, %39 : vector<32x128xf32>
    %41 = vector.shape_cast %40 : vector<32x128xf32> to vector<2x16x128xf32>
    %42 = vector.extract_strided_slice %41 {offsets = [0, 0, 0], sizes = [2, 14, 128], strides = [1, 1, 1]} : vector<2x16x128xf32> to vector<2x14x128xf32>
    %c0_24 = arith.constant 0 : index
    %c2_25 = arith.constant 2 : index
    %c0_26 = arith.constant 0 : index
    %43 = vector.load %arg12[%c0_24, %c2_25, %c0_26] : memref<2x18x128xf32, #tpu.memory_space<vmem>>, vector<2x14x128xf32>
    tpu.vector_store %arg12[%c0_24, %c2_25, %c0_26], %42 {strides = array<i32>} : memref<2x18x128xf32, #tpu.memory_space<vmem>>, vector<2x14x128xf32>,
    %c0_27 = arith.constant 0 : index
    %c0_28 = arith.constant 0 : index
    %c0_29 = arith.constant 0 : index
    %44 = vector.load %arg12[%c0_27, %c0_28, %c0_29] : memref<2x18x128xf32, #tpu.memory_space<vmem>>, vector<2x16x128xf32>
    %c0_30 = arith.constant 0 : index
    %c1_31 = arith.constant 1 : index
    %c0_32 = arith.constant 0 : index
    %45 = vector.load %arg12[%c0_30, %c1_31, %c0_32] : memref<2x18x128xf32, #tpu.memory_space<vmem>>, vector<2x16x128xf32>
    %c0_33 = arith.constant 0 : index
    %c2_34 = arith.constant 2 : index
    %c0_35 = arith.constant 0 : index
    %46 = vector.load %arg12[%c0_33, %c2_34, %c0_35] : memref<2x18x128xf32, #tpu.memory_space<vmem>>, vector<2x16x128xf32>
    %47 = tpu.concatenate %44, %45, %46 in 2 : vector<2x16x128xf32>, vector<2x16x128xf32>, vector<2x16x128xf32> -> vector<2x16x384xf32>
    %48 = vector.shape_cast %47 : vector<2x16x384xf32> to vector<32x384xf32>
    %c0_36 = arith.constant 0 : index
    %c0_37 = arith.constant 0 : index
    %49 = vector.load %arg2[%c0_36, %c0_37] : memref<384x128xf32, #tpu.memory_space<vmem>>, vector<384x128xf32>
    %cst_38 = arith.constant dense<0.000000e+00> : vector<32x128xf32>
    %50 = tpu.matmul %48, %49, %cst_38 {dimension_numbers = #tpu.dot_dimension_numbers<[1], [0], [0], [1], [0, 0, 1, 1], [], []>} : vector<32x384xf32>, vector<384x128xf32>, vector<32x128xf32> -> vector<32x128xf32>
    %51 = vector.broadcast %0 : vector<32x1xf32> to vector<32x128xf32>
    %52 = arith.mulf %50, %51 : vector<32x128xf32>
    %cst_39 = arith.constant dense<0.000000e+00> : vector<128xf32>
    %53 = vector.multi_reduction <add>, %52, %cst_39 [0] : vector<32x128xf32> to vector<128xf32>
    %54 = vector.shape_cast %53 : vector<128xf32> to vector<1x128xf32>
    %55 = arith.mulf %52, %52 : vector<32x128xf32>
    %cst_40 = arith.constant dense<0.000000e+00> : vector<128xf32>
    %56 = vector.multi_reduction <add>, %55, %cst_40 [0] : vector<32x128xf32> to vector<128xf32>
    %57 = vector.shape_cast %56 : vector<128xf32> to vector<1x128xf32>
    %cst_41 = arith.constant 0.0357142873 : f32
    %58 = vector.broadcast %cst_41 : f32 to vector<1x128xf32>
    %59 = arith.mulf %54, %58 : vector<1x128xf32>
    %cst_42 = arith.constant 0.0357142873 : f32
    %60 = vector.broadcast %cst_42 : f32 to vector<1x128xf32>
    %61 = arith.mulf %57, %60 : vector<1x128xf32>
    %62 = arith.mulf %59, %59 : vector<1x128xf32>
    %63 = arith.subf %61, %62 : vector<1x128xf32>
    %cst_43 = arith.constant 9.99999974E-6 : f32
    %64 = vector.broadcast %cst_43 : f32 to vector<1x128xf32>
    %65 = arith.addf %63, %64 : vector<1x128xf32>
    %66 = math.rsqrt %65 : vector<1x128xf32>
    %c0_44 = arith.constant 0 : index
    %c0_45 = arith.constant 0 : index
    %67 = vector.load %arg6[%c0_44, %c0_45] : memref<1x128xf32, #tpu.memory_space<vmem>>, vector<1x128xf32>
    %68 = arith.mulf %66, %67 : vector<1x128xf32>
    %c0_46 = arith.constant 0 : index
    %c0_47 = arith.constant 0 : index
    %69 = vector.load %arg7[%c0_46, %c0_47] : memref<1x128xf32, #tpu.memory_space<vmem>>, vector<1x128xf32>
    %70 = arith.mulf %59, %68 : vector<1x128xf32>
    %71 = arith.subf %69, %70 : vector<1x128xf32>
    %72 = vector.broadcast %68 : vector<1x128xf32> to vector<32x128xf32>
    %73 = arith.mulf %50, %72 : vector<32x128xf32>
    %74 = vector.broadcast %71 : vector<1x128xf32> to vector<32x128xf32>
    %75 = arith.addf %73, %74 : vector<32x128xf32>
    %76 = arith.negf %75 : vector<32x128xf32>
    %77 = math.exp %76 : vector<32x128xf32>
    %cst_48 = arith.constant 1.000000e+00 : f32
    %78 = vector.broadcast %cst_48 : f32 to vector<32x128xf32>
    %79 = arith.addf %78, %77 : vector<32x128xf32>
    %80 = arith.divf %78, %79 : vector<32x128xf32>
    %81 = arith.mulf %75, %80 : vector<32x128xf32>
    %82 = vector.shape_cast %81 : vector<32x128xf32> to vector<2x16x128xf32>
    %83 = vector.extract_strided_slice %82 {offsets = [0, 0, 0], sizes = [2, 14, 128], strides = [1, 1, 1]} : vector<2x16x128xf32> to vector<2x14x128xf32>
    %c0_49 = arith.constant 0 : index
    %c2_50 = arith.constant 2 : index
    %c0_51 = arith.constant 0 : index
    %84 = vector.load %arg12[%c0_49, %c2_50, %c0_51] : memref<2x18x128xf32, #tpu.memory_space<vmem>>, vector<2x14x128xf32>
    tpu.vector_store %arg12[%c0_49, %c2_50, %c0_51], %83 {strides = array<i32>} : memref<2x18x128xf32, #tpu.memory_space<vmem>>, vector<2x14x128xf32>,
    %c0_52 = arith.constant 0 : index
    %c0_53 = arith.constant 0 : index
    %c0_54 = arith.constant 0 : index
    %85 = vector.load %arg12[%c0_52, %c0_53, %c0_54] : memref<2x18x128xf32, #tpu.memory_space<vmem>>, vector<2x16x128xf32>
    %c0_55 = arith.constant 0 : index
    %c1_56 = arith.constant 1 : index
    %c0_57 = arith.constant 0 : index
    %86 = vector.load %arg12[%c0_55, %c1_56, %c0_57] : memref<2x18x128xf32, #tpu.memory_space<vmem>>, vector<2x16x128xf32>
    %c0_58 = arith.constant 0 : index
    %c2_59 = arith.constant 2 : index
    %c0_60 = arith.constant 0 : index
    %87 = vector.load %arg12[%c0_58, %c2_59, %c0_60] : memref<2x18x128xf32, #tpu.memory_space<vmem>>, vector<2x16x128xf32>
    %88 = tpu.concatenate %85, %86, %87 in 2 : vector<2x16x128xf32>, vector<2x16x128xf32>, vector<2x16x128xf32> -> vector<2x16x384xf32>
    %89 = vector.shape_cast %88 : vector<2x16x384xf32> to vector<32x384xf32>
    %c0_61 = arith.constant 0 : index
    %c0_62 = arith.constant 0 : index
    %90 = vector.load %arg3[%c0_61, %c0_62] : memref<384x128xf32, #tpu.memory_space<vmem>>, vector<384x128xf32>
    %cst_63 = arith.constant dense<0.000000e+00> : vector<32x128xf32>
    %91 = tpu.matmul %89, %90, %cst_63 {dimension_numbers = #tpu.dot_dimension_numbers<[1], [0], [0], [1], [0, 0, 1, 1], [], []>} : vector<32x384xf32>, vector<384x128xf32>, vector<32x128xf32> -> vector<32x128xf32>
    %92 = arith.addf %9, %91 : vector<32x128xf32>
    %93 = vector.broadcast %0 : vector<32x1xf32> to vector<32x128xf32>
    %94 = arith.mulf %92, %93 : vector<32x128xf32>
    %cst_64 = arith.constant dense<0.000000e+00> : vector<128xf32>
    %95 = vector.multi_reduction <add>, %94, %cst_64 [0] : vector<32x128xf32> to vector<128xf32>
    %96 = vector.shape_cast %95 : vector<128xf32> to vector<1x128xf32>
    %97 = arith.mulf %94, %94 : vector<32x128xf32>
    %cst_65 = arith.constant dense<0.000000e+00> : vector<128xf32>
    %98 = vector.multi_reduction <add>, %97, %cst_65 [0] : vector<32x128xf32> to vector<128xf32>
    %99 = vector.shape_cast %98 : vector<128xf32> to vector<1x128xf32>
    %cst_66 = arith.constant 0.0357142873 : f32
    %100 = vector.broadcast %cst_66 : f32 to vector<1x128xf32>
    %101 = arith.mulf %96, %100 : vector<1x128xf32>
    %cst_67 = arith.constant 0.0357142873 : f32
    %102 = vector.broadcast %cst_67 : f32 to vector<1x128xf32>
    %103 = arith.mulf %99, %102 : vector<1x128xf32>
    %104 = arith.mulf %101, %101 : vector<1x128xf32>
    %105 = arith.subf %103, %104 : vector<1x128xf32>
    %cst_68 = arith.constant 9.99999974E-6 : f32
    %106 = vector.broadcast %cst_68 : f32 to vector<1x128xf32>
    %107 = arith.addf %105, %106 : vector<1x128xf32>
    %108 = math.rsqrt %107 : vector<1x128xf32>
    %c0_69 = arith.constant 0 : index
    %c0_70 = arith.constant 0 : index
    %109 = vector.load %arg8[%c0_69, %c0_70] : memref<1x128xf32, #tpu.memory_space<vmem>>, vector<1x128xf32>
    %110 = arith.mulf %108, %109 : vector<1x128xf32>
    %c0_71 = arith.constant 0 : index
    %c0_72 = arith.constant 0 : index
    %111 = vector.load %arg9[%c0_71, %c0_72] : memref<1x128xf32, #tpu.memory_space<vmem>>, vector<1x128xf32>
    %112 = arith.mulf %101, %110 : vector<1x128xf32>
    %113 = arith.subf %111, %112 : vector<1x128xf32>
    %114 = vector.broadcast %110 : vector<1x128xf32> to vector<32x128xf32>
    %115 = arith.mulf %92, %114 : vector<32x128xf32>
    %116 = vector.broadcast %113 : vector<1x128xf32> to vector<32x128xf32>
    %117 = arith.addf %115, %116 : vector<32x128xf32>
    %118 = arith.negf %117 : vector<32x128xf32>
    %119 = math.exp %118 : vector<32x128xf32>
    %cst_73 = arith.constant 1.000000e+00 : f32
    %120 = vector.broadcast %cst_73 : f32 to vector<32x128xf32>
    %121 = arith.addf %120, %119 : vector<32x128xf32>
    %122 = arith.divf %120, %121 : vector<32x128xf32>
    %123 = arith.mulf %117, %122 : vector<32x128xf32>
    %cst_74 = arith.constant 0.000000e+00 : f32
    %124 = vector.broadcast %cst_74 : f32 to vector<2x2x128xf32>
    %c0_75 = arith.constant 0 : index
    %c0_76 = arith.constant 0 : index
    %c0_77 = arith.constant 0 : index
    %125 = vector.load %arg11[%c0_75, %c0_76, %c0_77] : memref<2x16x128xf32, #tpu.memory_space<vmem>>, vector<2x2x128xf32>
    tpu.vector_store %arg11[%c0_75, %c0_76, %c0_77], %124 {strides = array<i32>} : memref<2x16x128xf32, #tpu.memory_space<vmem>>, vector<2x2x128xf32>,
    %126 = vector.shape_cast %123 : vector<32x128xf32> to vector<2x16x128xf32>
    %127 = vector.extract_strided_slice %126 {offsets = [0, 0, 0], sizes = [2, 14, 128], strides = [1, 1, 1]} : vector<2x16x128xf32> to vector<2x14x128xf32>
    %c0_78 = arith.constant 0 : index
    %c2_79 = arith.constant 2 : index
    %c0_80 = arith.constant 0 : index
    %128 = vector.load %arg11[%c0_78, %c2_79, %c0_80] : memref<2x16x128xf32, #tpu.memory_space<vmem>>, vector<2x14x128xf32>
    tpu.vector_store %arg11[%c0_78, %c2_79, %c0_80], %127 {strides = array<i32>} : memref<2x16x128xf32, #tpu.memory_space<vmem>>, vector<2x14x128xf32>,
    return
  }
}

</mosaic_0001>

<bundles_post_ra>
// kernel: tpu_custom_call.1
= control target key start
LH: loop header
LB: loop body
LE: loop exit
PB: predicated region body
PF: predicated region fallthrough
CT: control target
= control target key end

     0   :  { %16 = vsyncpa [#allocation4], 0  ;;  %s2002_s0 = inlined_call_operand.vmem [shape: f32[2,18,128], index: 0, kind: input, shape index: {}]   ;;  %s2003_s1 = inlined_call_operand.hbm [shape: f32[384,128], index: 1, kind: input, shape index: {}]   ;;  %s2004_s2 = inlined_call_operand.hbm [shape: f32[384,128], index: 2, kind: input, shape index: {}]   ;;  %s2005_s3 = inlined_call_operand.hbm [shape: f32[384,128], index: 3, kind: input, shape index: {}]   ;;  %s2006_s4 = inlined_call_operand.vmem [shape: f32[1,128], index: 4, kind: input, shape index: {}]   ;;  %s2007_s5 = inlined_call_operand.vmem [shape: f32[1,128], index: 5, kind: input, shape index: {}]   ;;  %s2008_s6 = inlined_call_operand.vmem [shape: f32[1,128], index: 6, kind: input, shape index: {}]   ;;  %s2009_s7 = inlined_call_operand.vmem [shape: f32[1,128], index: 7, kind: input, shape index: {}]   ;;  %s2010_s8 = inlined_call_operand.vmem [shape: f32[1,128], index: 8, kind: input, shape index: {}]   ;;  %s2011_s9 = inlined_call_operand.vmem [shape: f32[1,128], index: 9, kind: input, shape index: {}]   ;;  %s2012_s10 = inlined_call_operand.vmem [shape: f32[32,1], index: 10, kind: input, shape index: {}]   ;;  %s2013_s11 = inlined_call_operand.hbm [shape: f32[2,16,128], index: 11, kind: output, shape index: {}]  }
   0x1   :  { %17 = vsyncpa [#allocation7], 0 }
   0x2   :  { %18 = vsyncpa [#allocation5], 0  ;;  %s1753_s17 = smov [#allocation6]   ;;  %s1754_s19 = smov [#allocation3]  }
   0x3   :  { %s38_s18 = sshll.u32 %s1753_s17, 4  ;;  %s26_s20 = sshll.u32 %s1754_s19, 4  ;;  %s39_s18 = int_to_ptr.vmem [resolvable:$true] %s38_s18  ;;  %s1821_s20 = int_to_ptr.vmem [resolvable:$true] %s26_s20 }
   0x4   :  { %s1659_s23 = scalar_lea.hbm %s2004_s2, 6144 }
   0x5   :  { %p1660_p0 = scmp.ne.s32.totalorder %s2004_s2, %s1659_s23  ;;  %p1663_p1 = scmp.lt.u32.totalorder %s1659_s23, %s2004_s2 }
   0x7   :  { %p1665_p2 = pnand %p1663_p1, %p1660_p0 }
   0x9   :  { %1668 = shalt.err (!%p1665_p2)
}
   0xa   :  { %s1669_s28 = scalar_lea.vmem %s39_s18, 6144  ;;  %p1674_p4 = scmp.lt.s32.totalorder %s39_s18, %s39_s18 }
   0xb   :  { %p1670_p3 = scmp.ne.s32.totalorder %s39_s18, %s1669_s28  ;;  %p1675_p5 = scmp.lt.s32.totalorder %s1669_s28, %s1669_s28 }
   0xd   :  { %p1676_p6 = por %p1675_p5, %p1674_p4 }
   0xf   :  { %p1677_p7 = pnand %p1676_p6, %p1670_p3 }
  0x11   :  { %1680 = shalt.err (!%p1677_p7)
}
  0x12   :  { %s1755_s29 = smov 128   ;;  %s1756_s30 = smov 8  }
  0x13   :  { %44 = dma.hbm_to_vmem [thread:$0]  %s2004_s2, 6144, %s39_s18, [#allocation7], %s1755_s29, %s1755_s29, %s1756_s30  }
  0x14   :  { %s1681_s16 = scalar_lea.hbm %s2003_s1, 6144 }
  0x15   :  { %p1682_p8 = scmp.ne.s32.totalorder %s2003_s1, %s1681_s16  ;;  %p1685_p9 = scmp.lt.u32.totalorder %s1681_s16, %s2003_s1 }
  0x17   :  { %p1687_p10 = pnand %p1685_p9, %p1682_p8 }
  0x19   :  { %1690 = shalt.err (!%p1687_p10)
}
  0x1a   :  { %s1691_s23 = scalar_lea.vmem %s1821_s20, 6144  ;;  %p1696_p12 = scmp.lt.s32.totalorder %s1821_s20, %s1821_s20 }
  0x1b   :  { %p1692_p11 = scmp.ne.s32.totalorder %s1821_s20, %s1691_s23  ;;  %p1697_p13 = scmp.lt.s32.totalorder %s1691_s23, %s1691_s23 }
  0x1d   :  { %p1698_p0 = por %p1697_p13, %p1696_p12 }
  0x1f   :  { %p1699_p1 = pnand %p1698_p0, %p1692_p11 }
  0x21   :  { %1702 = shalt.err (!%p1699_p1)
}
  0x22   :  { %32 = dma.hbm_to_vmem [thread:$0]  %s2003_s1, 6144, %s1821_s20, [#allocation4], %s1755_s29, %s1755_s29, %s1756_s30  }
  0x23   :  { %s1757_s24 = smov [#allocation8]   ;;  %s1703_s28 = scalar_lea.hbm %s2005_s3, 6144 }
  0x24   :  { %s50_s25 = sshll.u32 %s1757_s24, 4  ;;  %p1704_p2 = scmp.ne.s32.totalorder %s2005_s3, %s1703_s28  ;;  %s51_s25 = int_to_ptr.vmem [resolvable:$true] %s50_s25 }
  0x25   :  { %p1707_p3 = scmp.lt.u32.totalorder %s1703_s28, %s2005_s3 }
  0x27   :  { %p1709_p4 = pnand %p1707_p3, %p1704_p2 }
  0x29   :  { %1712 = shalt.err (!%p1709_p4)
}
  0x2a   :  { %s1713_s16 = scalar_lea.vmem %s51_s25, 6144  ;;  %p1718_p6 = scmp.lt.s32.totalorder %s51_s25, %s51_s25 }
  0x2b   :  { %p1714_p5 = scmp.ne.s32.totalorder %s51_s25, %s1713_s16  ;;  %p1719_p7 = scmp.lt.s32.totalorder %s1713_s16, %s1713_s16 }
  0x2d   :  { %p1720_p8 = por %p1719_p7, %p1718_p6 }
  0x2f   :  { %p1721_p9 = pnand %p1720_p8, %p1714_p5 }
  0x31   :  { %1724 = shalt.err (!%p1721_p9)
}
  0x32   :  { %56 = dma.hbm_to_vmem [thread:$0]  %s2005_s3, 6144, %s51_s25, [#allocation7], %s1755_s29, %s1755_s29, %s1756_s30  }
  0x33   :  { %1747 = dma.done.wait [#allocation4], 6144  }
  0x34   :  { %1748 = vsyncadd [#allocation4], 4294961152 }
  0x35   :  { %1749 = dma.done.wait [#allocation7], 12288  }
  0x36   :  { %1750 = vsyncadd [#allocation7], 4294955008  ;;  %v1758_v0 = vmov 0   ;;  %v118_v1 = vld [vmem:[#allocation3 + $0x80] sm:$0xff]  ;;  %v119_v2 = vld [vmem:[#allocation3 + $0x88] sm:$0xff] }
  0x37   :  { %1603 = vset.pattern.permute.xlu0 %v1758_v0  ;;  %1604 = vset.pattern.permute.xlu1 %v1758_v0  ;;  %v102_v3 = vld [vmem:[#allocation3] sm:$0xff]  ;;  %v1403_v4 = vpack.c.bf16 %v119_v2, %v118_v1  ;;  %v103_v5 = vld [vmem:[#allocation3 + $0x8] sm:$0xff]  ;;  %v120_v10 = vld [vmem:[#allocation3 + $0x90] sm:$0xff] }
  0x38   :  { %v134_v6 = vld [vmem:[#allocation3 + $0x100] sm:$0xff]  ;;  %v135_v7 = vld [vmem:[#allocation3 + $0x108] sm:$0xff]  ;;  %v1405_v8 = vpack.c.bf16 %v103_v5, %v102_v3  ;;  %v121_v11 = vld [vmem:[#allocation3 + $0x98] sm:$0xff] }
  0x39   :  { %v1435_v9 = vpack.c.bf16 %v135_v7, %v134_v6  ;;  %v104_v12 = vld [vmem:[#allocation3 + $0x10] sm:$0xff]  ;;  %1404 = vmatprep.subr.bf16.mxu0 %v1403_v4  ;;  %v1407_v13 = vpack.c.bf16 %v121_v11, %v120_v10  ;;  %v105_v14 = vld [vmem:[#allocation3 + $0x18] sm:$0xff]  ;;  %v122_v19 = vld [vmem:[#allocation3 + $0xa0] sm:$0xff] }
  0x3a   :  { %v136_v15 = vld [vmem:[#allocation3 + $0x110] sm:$0xff]  ;;  %v137_v16 = vld [vmem:[#allocation3 + $0x118] sm:$0xff]  ;;  %1406 = vmatpush3.bf16.msra.mxu0 %v1405_v8  ;;  %v1409_v17 = vpack.c.bf16 %v105_v14, %v104_v12  ;;  %v123_v20 = vld [vmem:[#allocation3 + $0xa8] sm:$0xff] }
  0x3b   :  { %1436 = vmatprep.subr.bf16.mxu1 %v1435_v9  ;;  %v1439_v18 = vpack.c.bf16 %v137_v16, %v136_v15  ;;  %v106_v21 = vld [vmem:[#allocation3 + $0x20] sm:$0xff]  ;;  %1408 = vmatprep.subr.bf16.mxu0 %v1407_v13  ;;  %v1411_v22 = vpack.c.bf16 %v123_v20, %v122_v19  ;;  %v107_v23 = vld [vmem:[#allocation3 + $0x28] sm:$0xff]  ;;  %v124_v27 = vld [vmem:[#allocation3 + $0xb0] sm:$0xff] }
  0x3c   :  { %1438 = vmatpush3.bf16.msra.mxu1 %v1435_v9  ;;  %v138_v24 = vld [vmem:[#allocation3 + $0x120] sm:$0xff]  ;;  %v139_v25 = vld [vmem:[#allocation3 + $0x128] sm:$0xff]  ;;  %v125_v28 = vld [vmem:[#allocation3 + $0xb8] sm:$0xff]  ;;  %v1413_v31 = vpack.c.bf16 %v107_v23, %v106_v21 }
  0x3d   :  { %1440 = vmatprep.subr.bf16.mxu1 %v1439_v18  ;;  %v1443_v26 = vpack.c.bf16 %v139_v25, %v138_v24  ;;  %v140_v29 = vld [vmem:[#allocation3 + $0x130] sm:$0xff]  ;;  %v141_v30 = vld [vmem:[#allocation3 + $0x138] sm:$0xff]  ;;  %v1415_v32 = vpack.c.bf16 %v125_v28, %v124_v27  ;;  %v126_v36 = vld [vmem:[#allocation3 + $0xc0] sm:$0xff]  ;;  %v1759_v25 = vmov 0.0  }
  0x3e   :  { %1410 = vmatpush3.bf16.msra.mxu0 %v1409_v17  ;;  %v108_v33 = vld [vmem:[#allocation3 + $0x30] sm:$0xff]  ;;  %v109_v34 = vld [vmem:[#allocation3 + $0x38] sm:$0xff]  ;;  %v1447_v35 = vpack.c.bf16 %v141_v30, %v140_v29  ;;  %v127_v37 = vld [vmem:[#allocation3 + $0xc8] sm:$0xff]  ;;  %85 = vst [vmem:[#allocation2 + $0x8] sm:$0xff] %v1759_v25 }
  0x3f   :  { %1412 = vmatprep.subr.bf16.mxu0 %v1411_v22  ;;  %v142_v38 = vld [vmem:[#allocation3 + $0x140] sm:$0xff]  ;;  %v143_v39 = vld [vmem:[#allocation3 + $0x148] sm:$0xff]  ;;  %v1417_v40 = vpack.c.bf16 %v109_v34, %v108_v33  ;;  %v1419_v41 = vpack.c.bf16 %v127_v37, %v126_v36  ;;  %v128_v45 = vld [vmem:[#allocation3 + $0xd0] sm:$0xff]  ;;  %88 = vst [vmem:[#allocation2 + $0x20] sm:$0xff] %v1759_v25 }
  0x40   :  { %1442 = vmatpush3.bf16.msra.mxu1 %v1439_v18  ;;  %v110_v42 = vld [vmem:[#allocation3 + $0x40] sm:$0xff]  ;;  %v111_v43 = vld [vmem:[#allocation3 + $0x48] sm:$0xff]  ;;  %v1451_v44 = vpack.c.bf16 %v143_v39, %v142_v38  ;;  %v129_v46 = vld [vmem:[#allocation3 + $0xd8] sm:$0xff]  ;;  %84 = vst [vmem:[#allocation2] sm:$0xff] %v1759_v25 }
  0x41   :  { %1444 = vmatprep.subr.bf16.mxu1 %v1443_v26  ;;  %v144_v47 = vld [vmem:[#allocation3 + $0x150] sm:$0xff]  ;;  %v145_v48 = vld [vmem:[#allocation3 + $0x158] sm:$0xff]  ;;  %v1421_v49 = vpack.c.bf16 %v111_v43, %v110_v42  ;;  %v1423_v52 = vpack.c.bf16 %v129_v46, %v128_v45  ;;  %v130_v56 = vld [vmem:[#allocation3 + $0xe0] sm:$0xff]  ;;  %86 = vst [vmem:[#allocation2 + $0x10] sm:$0x3] %v1759_v25 }
  0x42   :  { %1414 = vmatpush3.bf16.msra.mxu0 %v1413_v31  ;;  %v94_v50 = vld [vmem:[%s2002_s0 + $0x1] sm:$0xff]  ;;  %v1455_v55 = vpack.c.bf16 %v145_v48, %v144_v47  ;;  %v131_v57 = vld [vmem:[#allocation3 + $0xe8] sm:$0xff]  ;;  %v146_v58 = vld [vmem:[#allocation3 + $0x160] sm:$0xff]  ;;  %87 = vst [vmem:[#allocation2 + $0x18] sm:$0xff] %v1759_v25 }
  0x43   :  { %1416 = vmatprep.subr.bf16.mxu0 %v1415_v32  ;;  %v98_v51 = vld [vmem:[%s2002_s0 + $0x2] sm:$0xff]  ;;  %214 = vmatprep.mubr.f32.mxu0 %v94_v50  ;;  %v147_v59 = vld [vmem:[#allocation3 + $0x168] sm:$0xff]  ;;  %v82_v62 = vld [vmem:[%s2012_s10 + $0x10] sm:$0xff]  ;;  %v1427_v63 = vpack.c.bf16 %v131_v57, %v130_v56  ;;  %89 = vst [vmem:[#allocation2 + $0x28] sm:$0x3] %v1759_v25 }
  0x44   :  { %1446 = vmatpush3.bf16.msra.mxu1 %v1443_v26  ;;  %v112_v53 = vld [vmem:[#allocation3 + $0x50] sm:$0xff]  ;;  %v113_v54 = vld [vmem:[#allocation3 + $0x58] sm:$0xff]  ;;  %1321 = vmatprep.mubr.f32.mxu1 %v98_v51  ;;  %v114_v0 = vld [vmem:[#allocation3 + $0x60] sm:$0xff]  ;;  %v1459_v2 = vpack.c.bf16 %v147_v59, %v146_v58  ;;  %1061 = vst [vmem:[#allocation9] sm:$0x3] %v1759_v25 }
  0x45   :  { %1448 = vmatprep.subr.bf16.mxu1 %v1447_v35  ;;  %v1425_v60 = vpack.c.bf16 %v113_v54, %v112_v53  ;;  %v80_v61 = vld [vmem:[%s2012_s10] sm:$0xff]  ;;  %v115_v1 = vld [vmem:[#allocation3 + $0x68] sm:$0xff]  ;;  %v133_v4 = vld [vmem:[#allocation3 + $0xf8] sm:$0xff]  ;;  %332 = vperm.xlu1 %1604, %v82_v62   ;;  %1062 = vst [vmem:[#allocation9 + $0x10] sm:$0x3] %v1759_v25 }
  0x46   :  { %1418 = vmatpush3.bf16.msra.mxu0 %v1417_v40  ;;  %v132_v3 = vld [vmem:[#allocation3 + $0xf0] sm:$0xff]  ;;  %322 = vperm.xlu0 %1603, %v80_v61   ;;  %v149_v6 = vld [vmem:[#allocation3 + $0x178] sm:$0xff]  ;;  %v1429_v8 = vpack.c.bf16 %v115_v1, %v114_v0  ;;  %v83_v9 = vld [vmem:[%s2012_s10 + $0x18] sm:$0xff] }
  0x47   :  { %1420 = vmatprep.subr.bf16.mxu0 %v1419_v41  ;;  %v148_v5 = vld [vmem:[#allocation3 + $0x170] sm:$0xff]  ;;  %v81_v7 = vld [vmem:[%s2012_s10 + $0x8] sm:$0xff]  ;;  %v1431_v10 = vpack.c.bf16 %v133_v4, %v132_v3  ;;  %v92_v22 = vld [vmem:[%s2002_s0 + $0x18] sm:$0xff] }
  0x48   :  { %1450 = vmatpush3.bf16.msra.mxu1 %v1447_v35  ;;  %v116_v11 = vld [vmem:[#allocation3 + $0x70] sm:$0xff]  ;;  %v117_v12 = vld [vmem:[#allocation3 + $0x78] sm:$0xff]  ;;  %v1463_v13 = vpack.c.bf16 %v149_v6, %v148_v5  ;;  %v471_v26 = vld [vmem:[#allocation6 + $0x100] sm:$0xff] }
  0x49   :  { %1452 = vmatprep.subr.bf16.mxu1 %v1451_v44  ;;  %337 = vperm.xlu1 %1604, %v83_v9   ;;  %v1433_v14 = vpack.c.bf16 %v117_v12, %v116_v11  ;;  %v90_v15 = vld [vmem:[%s2002_s0] sm:$0xff]  ;;  %v99_v16 = vld [vmem:[%s2002_s0 + $0xa] sm:$0xff]  ;;  %v472_v27 = vld [vmem:[#allocation6 + $0x108] sm:$0xff] }
  0x4a   :  { %1422 = vmatpush3.bf16.msra.mxu0 %v1421_v49  ;;  %327 = vperm.xlu0 %1603, %v81_v7   ;;  %v95_v17 = vld [vmem:[%s2002_s0 + $0x9] sm:$0xff]  ;;  %v100_v18 = vld [vmem:[%s2002_s0 + $0x1a] sm:$0xff]  ;;  %v1499_v30 = vpack.c.bf16 %v472_v27, %v471_v26 }
  0x4b   :  { %1424 = vmatprep.subr.bf16.mxu0 %v1423_v52  ;;  %v91_v19 = vld [vmem:[%s2002_s0 + $0x8] sm:$0xff]  ;;  %v96_v20 = vld [vmem:[%s2002_s0 + $0x19] sm:$0xff]  ;;  %v455_v28 = vld [vmem:[#allocation6 + $0x80] sm:$0xff] }
  0x4c   :  { %1454 = vmatpush3.bf16.msra.mxu1 %v1451_v44  ;;  %v101_v21 = vld [vmem:[%s2002_s0 + $0x22] sm:$0xff]  ;;  %v456_v29 = vld [vmem:[#allocation6 + $0x88] sm:$0xff]  ;;  %v439_v32 = vld [vmem:[#allocation6] sm:$0xff] }
  0x4d   :  { %1456 = vmatprep.subr.bf16.mxu1 %v1455_v55  ;;  %v97_v23 = vld [vmem:[%s2002_s0 + $0x21] sm:$0xff]  ;;  %v1467_v31 = vpack.c.bf16 %v456_v29, %v455_v28  ;;  %v440_v33 = vld [vmem:[#allocation6 + $0x8] sm:$0xff]  ;;  %v475_v44 = vld [vmem:[#allocation6 + $0x120] sm:$0xff] }
  0x4e   :  { %1426 = vmatpush3.bf16.msra.mxu0 %v1425_v60  ;;  %v93_v24 = vld [vmem:[%s2002_s0 + $0x20] sm:$0xff]  ;;  %v1469_v34 = vpack.c.bf16 %v440_v33, %v439_v32  ;;  %v474_v36 = vld [vmem:[#allocation6 + $0x118] sm:$0xff]  ;;  %v476_v45 = vld [vmem:[#allocation6 + $0x128] sm:$0xff] }
  0x4f   :  { %1428 = vmatprep.subr.bf16.mxu0 %v1427_v63  ;;  %v473_v35 = vld [vmem:[#allocation6 + $0x110] sm:$0xff]  ;;  %v458_v38 = vld [vmem:[#allocation6 + $0x98] sm:$0xff]  ;;  %v459_v46 = vld [vmem:[#allocation6 + $0xa0] sm:$0xff]  ;;  %v1507_v48 = vpack.c.bf16 %v476_v45, %v475_v44 }
  0x50   :  { %1458 = vmatpush3.bf16.msra.mxu1 %v1455_v55  ;;  %v457_v37 = vld [vmem:[#allocation6 + $0x90] sm:$0xff]  ;;  %v1503_v39 = vpack.c.bf16 %v474_v36, %v473_v35  ;;  %v442_v42 = vld [vmem:[#allocation6 + $0x18] sm:$0xff]  ;;  %v460_v47 = vld [vmem:[#allocation6 + $0xa8] sm:$0xff] }
  0x51   :  { %1460 = vmatprep.subr.bf16.mxu1 %v1459_v2  ;;  %v1471_v40 = vpack.c.bf16 %v458_v38, %v457_v37  ;;  %v441_v41 = vld [vmem:[#allocation6 + $0x10] sm:$0xff]  ;;  %v1475_v49 = vpack.c.bf16 %v460_v47, %v459_v46  ;;  %v443_v50 = vld [vmem:[#allocation6 + $0x20] sm:$0xff]  ;;  %v444_v51 = vld [vmem:[#allocation6 + $0x28] sm:$0xff] }
  0x52   :  { %1430 = vmatpush3.bf16.msra.mxu0 %v1429_v8  ;;  %v1473_v43 = vpack.c.bf16 %v442_v42, %v441_v41  ;;  %v1477_v52 = vpack.c.bf16 %v444_v51, %v443_v50  ;;  %v477_v53 = vld [vmem:[#allocation6 + $0x130] sm:$0xff]  ;;  %v478_v54 = vld [vmem:[#allocation6 + $0x138] sm:$0xff]  ;;  %v479_v62 = vld [vmem:[#allocation6 + $0x140] sm:$0xff] }
  0x53   :  { %1432 = vmatprep.subr.bf16.mxu0 %v1431_v10  ;;  %v461_v55 = vld [vmem:[#allocation6 + $0xb0] sm:$0xff]  ;;  %v462_v56 = vld [vmem:[#allocation6 + $0xb8] sm:$0xff]  ;;  %v1511_v57 = vpack.c.bf16 %v478_v54, %v477_v53  ;;  %v480_v63 = vld [vmem:[#allocation6 + $0x148] sm:$0xff] }
  0x54   :  { %1462 = vmatpush3.bf16.msra.mxu1 %v1459_v2  ;;  %v1479_v58 = vpack.c.bf16 %v462_v56, %v461_v55  ;;  %v445_v59 = vld [vmem:[#allocation6 + $0x30] sm:$0xff]  ;;  %v446_v60 = vld [vmem:[#allocation6 + $0x38] sm:$0xff]  ;;  %v463_v0 = vld [vmem:[#allocation6 + $0xc0] sm:$0xff]  ;;  %v1515_v2 = vpack.c.bf16 %v480_v63, %v479_v62 }
  0x55   :  { %1464 = vmatprep.subr.bf16.mxu1 %v1463_v13  ;;  %v1481_v61 = vpack.c.bf16 %v446_v60, %v445_v59  ;;  %v464_v1 = vld [vmem:[#allocation6 + $0xc8] sm:$0xff]  ;;  %v447_v4 = vld [vmem:[#allocation6 + $0x40] sm:$0xff]  ;;  %v481_v7 = vld [vmem:[#allocation6 + $0x150] sm:$0xff] }
  0x56   :  { %1434 = vmatpush3.bf16.msra.mxu0 %v1433_v14  ;;  %v1483_v3 = vpack.c.bf16 %v464_v1, %v463_v0  ;;  %v448_v5 = vld [vmem:[#allocation6 + $0x48] sm:$0xff]  ;;  %v482_v8 = vld [vmem:[#allocation6 + $0x158] sm:$0xff]  ;;  %v465_v9 = vld [vmem:[#allocation6 + $0xd0] sm:$0xff] }
  0x57   :  { %1468 = vmatprep.subr.bf16.mxu0 %v1467_v31  ;;  %v1485_v6 = vpack.c.bf16 %v448_v5, %v447_v4  ;;  %v466_v10 = vld [vmem:[#allocation6 + $0xd8] sm:$0xff]  ;;  %v1519_v11 = vpack.c.bf16 %v482_v8, %v481_v7  ;;  %v469_v25 = vld [vmem:[#allocation6 + $0xf0] sm:$0xff] }
  0x58   :  { %1466 = vmatpush3.bf16.msra.mxu1 %v1463_v13  ;;  %v1487_v12 = vpack.c.bf16 %v466_v10, %v465_v9  ;;  %v449_v13 = vld [vmem:[#allocation6 + $0x50] sm:$0xff]  ;;  %v450_v14 = vld [vmem:[#allocation6 + $0x58] sm:$0xff] }
  0x59   :  { %215 = vmatmul.mubr.f32.vlgmr.msra.gmra.mrb[0].mxu0 %v90_v15  ;;  %1500 = vmatprep.subr.bf16.mxu1 %v1499_v30  ;;  %v1489_v15 = vpack.c.bf16 %v450_v14, %v449_v13  ;;  %v470_v26 = vld [vmem:[#allocation6 + $0xf8] sm:$0xff]  ;;  %v485_v27 = vld [vmem:[#allocation6 + $0x170] sm:$0xff] }
  0x5a   :  { %219 = vmatprep.mubr.f32.mxu0 %v95_v17  ;;  %1470 = vmatpush3.bf16.msra.mxu0 %v1469_v34  ;;  %v484_v17 = vld [vmem:[#allocation6 + $0x168] sm:$0xff]  ;;  %v1495_v28 = vpack.c.bf16 %v470_v26, %v469_v25  ;;  %v486_v29 = vld [vmem:[#allocation6 + $0x178] sm:$0xff]  ;;  %v377_v25 = vlaneseq }
  0x5b   :  { %1322 = vmatmul.mubr.f32.vlgmr.msra.gmra.mrb[0].mxu1 %v99_v16  ;;  %1472 = vmatprep.subr.bf16.mxu0 %v1471_v40  ;;  %v483_v16 = vld [vmem:[#allocation6 + $0x160] sm:$0xff]  ;;  %v454_v31 = vld [vmem:[#allocation6 + $0x78] sm:$0xff]  ;;  %v1527_v32 = vpack.c.bf16 %v486_v29, %v485_v27  ;;  %v372_v27 = vld [vmem:[%s2006_s4] sm:$0x1] }
  0x5c   :  { %1324 = vmatprep.mubr.f32.mxu1 %v100_v18  ;;  %1502 = vmatpush3.bf16.msra.mxu1 %v1499_v30  ;;  %v467_v18 = vld [vmem:[#allocation6 + $0xe0] sm:$0xff]  ;;  %v453_v30 = vld [vmem:[#allocation6 + $0x70] sm:$0xff]  ;;  %v378_v26 = vshrl.u32 %v377_v25, 7  ;;  %v757_v25 = vld [vmem:[#allocation8 + $0x8] sm:$0xff] }
  0x5d   :  { %220 = vmatmul.mubr.f32.gmra.mrb[2].mxu0 %v91_v19  ;;  %1504 = vmatprep.subr.bf16.mxu1 %v1503_v39  ;;  %v468_v19 = vld [vmem:[#allocation6 + $0xe8] sm:$0xff]  ;;  %v1497_v33 = vpack.c.bf16 %v454_v31, %v453_v30  ;;  %v374_v31 = vld [vmem:[%s2007_s5] sm:$0x1] }
  0x5e   :  { %224 = vmatprep.mubr.f32.mxu0 %v96_v20  ;;  %1474 = vmatpush3.bf16.msra.mxu0 %v1473_v43  ;;  %v1523_v20 = vpack.c.bf16 %v484_v17, %v483_v16 }
  0x5f   :  { %1325 = vmatmul.mubr.f32.gmra.mrb[2].mxu1 %v101_v21  ;;  %1476 = vmatprep.subr.bf16.mxu0 %v1475_v49  ;;  %v1491_v21 = vpack.c.bf16 %v468_v19, %v467_v18 }
  0x60   :  { %1506 = vmatpush3.bf16.msra.mxu1 %v1503_v39 }
  0x61   :  { %225 = vmatmul.mubr.f32.gmra.mrb[4].mxu0 %v92_v22  ;;  %1508 = vmatprep.subr.bf16.mxu1 %v1507_v48  ;;  %v451_v22 = vld [vmem:[#allocation6 + $0x60] sm:$0xff] }
  0x62   :  { %229 = vmatprep.mubr.f32.mxu0 %v97_v23  ;;  %1478 = vmatpush3.bf16.msra.mxu0 %v1477_v52  ;;  %v452_v23 = vld [vmem:[#allocation6 + $0x68] sm:$0xff] }
  0x63   :  { %1480 = vmatprep.subr.bf16.mxu0 %v1479_v58 }
  0x64   :  { %1510 = vmatpush3.bf16.msra.mxu1 %v1507_v48 }
  0x65   :  { %230 = vmatmul.mubr.f32.gmra.mrb[6].mxu0 %v93_v24  ;;  %1512 = vmatprep.subr.bf16.mxu1 %v1511_v57  ;;  %v1493_v24 = vpack.c.bf16 %v452_v23, %v451_v22 }
  0x66   :  { %1482 = vmatpush3.bf16.msra.mxu0 %v1481_v61 }
  0x67   :  { %1484 = vmatprep.subr.bf16.mxu0 %v1483_v3 }
  0x68   :  { %1514 = vmatpush3.bf16.msra.mxu1 %v1511_v57 }
  0x69   :  { %1516 = vmatprep.subr.bf16.mxu1 %v1515_v2 }
  0x6a   :  { %1486 = vmatpush3.bf16.msra.mxu0 %v1485_v6 }
  0x6b   :  { %1488 = vmatprep.subr.bf16.mxu0 %v1487_v12 }
  0x6c   :  { %1518 = vmatpush3.bf16.msra.mxu1 %v1515_v2 }
  0x6d   :  { %1520 = vmatprep.subr.bf16.mxu1 %v1519_v11 }
  0x6e   :  { %1490 = vmatpush3.bf16.msra.mxu0 %v1489_v15 }
  0x6f   :  { %1492 = vmatprep.subr.bf16.mxu0 %v1491_v21 }
  0x70   :  { %1522 = vmatpush3.bf16.msra.mxu1 %v1519_v11 }
  0x71   :  { %1524 = vmatprep.subr.bf16.mxu1 %v1523_v20 }
  0x72   :  { %1494 = vmatpush3.bf16.msra.mxu0 %v1493_v24 }
  0x73   :  { %1496 = vmatprep.subr.bf16.mxu0 %v1495_v28  ;;  %v1948_v28 = vsub.s32 0, %v378_v26 }
  0x74   :  { %1526 = vmatpush3.bf16.msra.mxu1 %v1523_v20 }
  0x75   :  { %1528 = vmatprep.subr.bf16.mxu1 %v1527_v32 }
  0x76   :  { %1498 = vmatpush3.bf16.msra.mxu0 %v1497_v33 }
  0x78   :  { %1530 = vmatpush3.bf16.msra.mxu1 %v1527_v32 }
  0xc4   :  { %v1931_v52 = vpop.permute.xlu1 %332 }
  0xc5   :  { %v1921_v35 = vpop.permute.xlu0 %322 }
  0xc8   :  { %v1941_v0 = vpop.permute.xlu1 %337 }
  0xc9   :  { %v1925_v46 = vpop.permute.xlu0 %327 }
 0x12c   :  { %v1129_v34 = vpop.f32.mrb[0].mxu0 }
 0x12d   :  { %v1130_v36 = vpop.f32.mrb[1].mxu0 }
 0x12e   :  { %v1323_v37 = vpop.f32.mrb[0].mxu1  ;;  %v1131_v38 = vadd.f32 %v1130_v36, %v1129_v34 }
 0x12f   :  { %v301_v39 = vpop.f32.mrb[1].mxu1 }
 0x130   :  { %v1923_v40 = vadd.f32 %v1131_v38, %v301_v39  ;;  %v1132_v41 = vpop.f32.mrb[2].mxu0 }
 0x131   :  { %v1133_v42 = vpop.f32.mrb[3].mxu0 }
 0x132   :  { %v1326_v43 = vpop.f32.mrb[2].mxu1  ;;  %v1134_v44 = vadd.f32 %v1133_v42, %v1132_v41  ;;  %v340_v53 = vmul.f32 %v1921_v35, %v1923_v40 }
 0x133   :  { %v311_v45 = vpop.f32.mrb[3].mxu1 }
 0x134   :  { %v1927_v47 = vadd.f32 %v1323_v37, %v1134_v44  ;;  %v1135_v48 = vpop.f32.mrb[4].mxu0  ;;  %v353_v60 = vmul.f32 %v340_v53, %v340_v53 }
 0x135   :  { %v1136_v49 = vpop.f32.mrb[5].mxu0 }
 0x136   :  { %v1137_v50 = vadd.f32 %v1136_v49, %v1135_v48  ;;  %v341_v51 = vmul.f32 %v1925_v46, %v1927_v47 }
 0x138   :  { %v1935_v54 = vadd.f32 %v1137_v50, %v311_v45  ;;  %v1138_v55 = vpop.f32.mrb[6].mxu0  ;;  %v354_v57 = vmul.f32 %v341_v51, %v341_v51  ;;  %v344_v61 = vadd.f32 %v341_v51, %v340_v53 }
 0x139   :  { %v1139_v56 = vpop.f32.mrb[7].mxu0 }
 0x13a   :  { %v342_v58 = vmul.f32 %v1931_v52, %v1935_v54  ;;  %v1140_v59 = vadd.f32 %v1139_v56, %v1138_v55  ;;  %v357_v1 = vadd.f32 %v354_v57, %v353_v60 }
 0x13c   :  { %v355_v62 = vmul.f32 %v342_v58, %v342_v58  ;;  %v1939_v63 = vadd.f32 %v1326_v43, %v1140_v59  ;;  %v345_v3 = vadd.f32 %v344_v61, %v342_v58 }
 0x13e   :  { %v343_v2 = vmul.f32 %v1941_v0, %v1939_v63  ;;  %v358_v6 = vadd.f32 %v357_v1, %v355_v62 }
 0x140   :  { %v346_v4 = vadd.f32 %v345_v3, %v343_v2  ;;  %v356_v5 = vmul.f32 %v343_v2, %v343_v2 }
 0x142   :  { %v347_v7 = vrot.slane %v346_v4, 4  ;;  %v359_v8 = vadd.f32 %v358_v6, %v356_v5 }
 0x144   :  { %v348_v9 = vadd.f32 %v347_v7, %v346_v4  ;;  %v360_v10 = vrot.slane %v359_v8, 4 }
 0x146   :  { %v349_v11 = vrot.slane %v348_v9, 2  ;;  %v361_v12 = vadd.f32 %v360_v10, %v359_v8 }
 0x148   :  { %v350_v13 = vadd.f32 %v349_v11, %v348_v9  ;;  %v362_v14 = vrot.slane %v361_v12, 2 }
 0x14a   :  { %v351_v15 = vrot.slane %v350_v13, 1  ;;  %v363_v16 = vadd.f32 %v362_v14, %v361_v12 }
 0x14c   :  { %v352_v17 = vadd.f32 %v351_v15, %v350_v13  ;;  %v364_v18 = vrot.slane %v363_v16, 1 }
 0x14e   :  { %v365_v19 = vadd.f32 %v364_v18, %v363_v16  ;;  %v366_v20 = vmul.f32 0.035714287, %v352_v17  ;;  %v788_v18 = vld [vmem:[#allocation8 + $0x100] sm:$0xff] }
 0x150   :  { %v367_v21 = vmul.f32 0.035714287, %v365_v19  ;;  %v368_v22 = vmul.f32 %v366_v20, %v366_v20  ;;  %v789_v19 = vld [vmem:[#allocation8 + $0x108] sm:$0xff] }
 0x152   :  { %v369_v23 = vsub.f32 %v367_v21, %v368_v22  ;;  %v773_v21 = vld [vmem:[#allocation8 + $0x88] sm:$0xff]  ;;  %v1563_v22 = vpack.c.bf16 %v789_v19, %v788_v18  ;;  %v784_v19 = vld [vmem:[#allocation8 + $0xe0] sm:$0xff] }
 0x153   :  { %v801_v18 = vld [vmem:[#allocation8 + $0x168] sm:$0xff] }
 0x154   :  { %v370_v24 = vadd.f32 1e-05, %v369_v23  ;;  %1564 = vmatprep.subr.bf16.mxu1 %v1563_v22 }
 0x156   :  { %1605 = vrsqrt.f32 %v370_v24  ;;  %v756_v24 = vld [vmem:[#allocation8] sm:$0xff] }
 0x157   :  { %v1533_v26 = vpack.c.bf16 %v757_v25, %v756_v24  ;;  %v769_v24 = vld [vmem:[#allocation8 + $0x68] sm:$0xff] }
 0x160   :  { %v1606_v29 = vpop.eup %1605 }
 0x161   :  { %v373_v30 = vmul.f32 %v1606_v29, %v372_v27  ;;  %v790_v27 = vld [vmem:[#allocation8 + $0x110] sm:$0xff]  ;;  %v791_v29 = vld [vmem:[#allocation8 + $0x118] sm:$0xff] }
 0x163   :  { %v375_v32 = vmul.f32 %v373_v30, %v366_v20  ;;  %v380_v33 = vrot.slane %v373_v30, %v1948_v28  ;;  %v772_v20 = vld [vmem:[#allocation8 + $0x80] sm:$0xff]  ;;  %v774_v30 = vld [vmem:[#allocation8 + $0x90] sm:$0xff] }
 0x164   :  { %v1531_v23 = vpack.c.bf16 %v773_v21, %v772_v20  ;;  %v785_v20 = vld [vmem:[#allocation8 + $0xe8] sm:$0xff] }
 0x165   :  { %v376_v34 = vsub.f32 %v374_v31, %v375_v32  ;;  %v381_v36 = vmul.f32 %v380_v33, %v1923_v40  ;;  %v382_v37 = vmul.f32 %v380_v33, %v1927_v47  ;;  %v383_v38 = vmul.f32 %v380_v33, %v1935_v54  ;;  %v775_v31 = vld [vmem:[#allocation8 + $0x98] sm:$0xff] }
 0x166   :  { %v384_v39 = vmul.f32 %v380_v33, %v1939_v63  ;;  %1532 = vmatprep.subr.bf16.mxu0 %v1531_v23  ;;  %v1567_v32 = vpack.c.bf16 %v791_v29, %v790_v27  ;;  %v1535_v33 = vpack.c.bf16 %v775_v31, %v774_v30  ;;  %v768_v23 = vld [vmem:[#allocation8 + $0x60] sm:$0xff]  ;;  %v787_v27 = vld [vmem:[#allocation8 + $0xf8] sm:$0xff]  ;;  %v802_v29 = vld [vmem:[#allocation8 + $0x170] sm:$0xff] }
 0x167   :  { %v389_v41 = vrot.slane %v376_v34, %v1948_v28  ;;  %v758_v34 = vld [vmem:[#allocation8 + $0x10] sm:$0xff]  ;;  %v1557_v25 = vpack.c.bf16 %v769_v24, %v768_v23  ;;  %v803_v31 = vld [vmem:[#allocation8 + $0x178] sm:$0xff] }
 0x169   :  { %v391_v42 = vadd.f32 %v389_v41, %v381_v36  ;;  %v392_v43 = vadd.f32 %v389_v41, %v382_v37  ;;  %v393_v44 = vadd.f32 %v389_v41, %v383_v38  ;;  %v394_v45 = vadd.f32 %v389_v41, %v384_v39  ;;  %v759_v36 = vld [vmem:[#allocation8 + $0x18] sm:$0xff]  ;;  %v792_v38 = vld [vmem:[#allocation8 + $0x120] sm:$0xff]  ;;  %v793_v39 = vld [vmem:[#allocation8 + $0x128] sm:$0xff] }
 0x16a   :  { %v1537_v37 = vpack.c.bf16 %v759_v36, %v758_v34  ;;  %v776_v41 = vld [vmem:[#allocation8 + $0xa0] sm:$0xff]  ;;  %v1591_v34 = vpack.c.bf16 %v803_v31, %v802_v29 }
 0x16b   :  { %v1085_v48 = vmul.f32 -1.442695, %v391_v42  ;;  %v1086_v49 = vmul.f32 -1.442695, %v392_v43  ;;  %v1087_v50 = vmul.f32 -1.442695, %v393_v44 }
 0x16c   :  { %v1088_v51 = vmul.f32 -1.442695, %v394_v45 }
 0x16d   :  { %1607 = vpow2.f32 %v1085_v48  ;;  %v761_v48 = vld [vmem:[#allocation8 + $0x28] sm:$0xff] }
 0x16e   :  { %1609 = vpow2.f32 %v1086_v49 }
 0x16f   :  { %1611 = vpow2.f32 %v1087_v50  ;;  %v794_v50 = vld [vmem:[#allocation8 + $0x130] sm:$0xff] }
 0x170   :  { %1613 = vpow2.f32 %v1088_v51  ;;  %v795_v51 = vld [vmem:[#allocation8 + $0x138] sm:$0xff] }
 0x177   :  { %v1608_v53 = vpop.eup %1607 }
 0x178   :  { %v1610_v55 = vpop.eup %1609  ;;  %v407_v56 = vadd.f32 1.0, %v1608_v53  ;;  %v778_v53 = vld [vmem:[#allocation8 + $0xb0] sm:$0xff] }
 0x179   :  { %v1612_v57 = vpop.eup %1611  ;;  %v408_v58 = vadd.f32 1.0, %v1610_v55  ;;  %v779_v55 = vld [vmem:[#allocation8 + $0xb8] sm:$0xff] }
 0x17a   :  { %v1614_v59 = vpop.eup %1613  ;;  %v409_v60 = vadd.f32 1.0, %v1612_v57  ;;  %1615 = vrcp.f32 %v407_v56  ;;  %v1575_v56 = vpack.c.bf16 %v795_v51, %v794_v50  ;;  %v1543_v57 = vpack.c.bf16 %v779_v55, %v778_v53 }
 0x17b   :  { %v410_v61 = vadd.f32 1.0, %v1614_v59  ;;  %1617 = vrcp.f32 %v408_v58  ;;  %v762_v58 = vld [vmem:[#allocation8 + $0x30] sm:$0xff]  ;;  %v763_v59 = vld [vmem:[#allocation8 + $0x38] sm:$0xff] }
 0x17c   :  { %1619 = vrcp.f32 %v409_v60  ;;  %v1545_v60 = vpack.c.bf16 %v763_v59, %v762_v58 }
 0x17d   :  { %1621 = vrcp.f32 %v410_v61  ;;  %v796_v61 = vld [vmem:[#allocation8 + $0x140] sm:$0xff] }
 0x184   :  { %v1616_v62 = vpop.eup %1615 }
 0x185   :  { %v1618_v1 = vpop.eup %1617  ;;  %v419_v2 = vmul.f32 %v1616_v62, %v391_v42  ;;  %v777_v42 = vld [vmem:[#allocation8 + $0xa8] sm:$0xff] }
 0x186   :  { %v1620_v3 = vpop.eup %1619  ;;  %v420_v4 = vmul.f32 %v1618_v1, %v392_v43  ;;  %v1571_v43 = vpack.c.bf16 %v793_v39, %v792_v38  ;;  %v797_v62 = vld [vmem:[#allocation8 + $0x148] sm:$0xff]  ;;  %v780_v1 = vld [vmem:[#allocation8 + $0xc0] sm:$0xff] }
 0x187   :  { %v1622_v5 = vpop.eup %1621  ;;  %v421_v6 = vmul.f32 %v1620_v3, %v393_v44  ;;  %423 = vst [vmem:[#allocation2 + $0x2] sm:$0xff] %v419_v2  ;;  %1359 = vmatprep.mubr.f32.mxu1 %v419_v2  ;;  %v1539_v44 = vpack.c.bf16 %v777_v42, %v776_v41  ;;  %v781_v2 = vld [vmem:[#allocation8 + $0xc8] sm:$0xff]  ;;  %v1579_v3 = vpack.c.bf16 %v797_v62, %v796_v61 }
 0x188   :  { %v422_v7 = vmul.f32 %v1622_v5, %v394_v45  ;;  %424 = vst [vmem:[#allocation2 + $0xa] sm:$0x3f] %v420_v4  ;;  %v760_v45 = vld [vmem:[#allocation8 + $0x20] sm:$0xff]  ;;  %v1547_v4 = vpack.c.bf16 %v781_v2, %v780_v1 }
 0x189   :  { %425 = vst [vmem:[#allocation2 + $0x1a] sm:$0xff] %v421_v6  ;;  %v1541_v49 = vpack.c.bf16 %v761_v48, %v760_v45  ;;  %v764_v5 = vld [vmem:[#allocation8 + $0x40] sm:$0xff] }
 0x18a   :  { %426 = vst [vmem:[#allocation2 + $0x22] sm:$0x3f] %v422_v7 }
 0x18e   :  { %v431_v8 = vld [vmem:[#allocation2 + $0x1] sm:$0xff] }
 0x18f   :  { %v427_v9 = vld [vmem:[#allocation2] sm:$0xff]  ;;  %551 = vmatprep.mubr.f32.mxu0 %v431_v8  ;;  %v436_v10 = vld [vmem:[#allocation2 + $0xa] sm:$0xff] }
 0x190   :  { %552 = vmatmul.mubr.f32.vlgmr.msra.gmra.mrb[8].mxu0 %v427_v9  ;;  %1360 = vmatmul.mubr.f32.vlgmr.msra.gmra.mrb[4].mxu1 %v436_v10  ;;  %v432_v11 = vld [vmem:[#allocation2 + $0x9] sm:$0xff]  ;;  %v433_v14 = vld [vmem:[#allocation2 + $0x19] sm:$0xff] }
 0x191   :  { %556 = vmatprep.mubr.f32.mxu0 %v432_v11  ;;  %1362 = vmatprep.mubr.f32.mxu1 %v421_v6  ;;  %v428_v12 = vld [vmem:[#allocation2 + $0x8] sm:$0xff]  ;;  %v429_v15 = vld [vmem:[#allocation2 + $0x18] sm:$0xff]  ;;  %v430_v17 = vld [vmem:[#allocation2 + $0x20] sm:$0xff] }
 0x192   :  { %v438_v13 = vld [vmem:[#allocation2 + $0x22] sm:$0xff]  ;;  %1566 = vmatpush3.bf16.msra.mxu1 %v1563_v22  ;;  %1534 = vmatpush3.bf16.msra.mxu0 %v1533_v26  ;;  %v765_v6 = vld [vmem:[#allocation8 + $0x48] sm:$0xff]  ;;  %v1555_v22 = vpack.c.bf16 %v785_v20, %v784_v19 }
 0x193   :  { %v434_v16 = vld [vmem:[#allocation2 + $0x21] sm:$0xff]  ;;  %1568 = vmatprep.subr.bf16.mxu1 %v1567_v32  ;;  %1536 = vmatprep.subr.bf16.mxu0 %v1535_v33  ;;  %v1549_v7 = vpack.c.bf16 %v765_v6, %v764_v5 }
 0x194   :  { %557 = vmatmul.mubr.f32.gmra.mrb[10].mxu0 %v428_v12  ;;  %1363 = vmatmul.mubr.f32.gmra.mrb[6].mxu1 %v438_v13  ;;  %v798_v8 = vld [vmem:[#allocation8 + $0x150] sm:$0xff]  ;;  %v799_v9 = vld [vmem:[#allocation8 + $0x158] sm:$0xff] }
 0x195   :  { %561 = vmatprep.mubr.f32.mxu0 %v433_v14  ;;  %v782_v10 = vld [vmem:[#allocation8 + $0xd0] sm:$0xff]  ;;  %v783_v11 = vld [vmem:[#allocation8 + $0xd8] sm:$0xff]  ;;  %v1583_v12 = vpack.c.bf16 %v799_v9, %v798_v8 }
 0x196   :  { %1570 = vmatpush3.bf16.msra.mxu1 %v1567_v32  ;;  %1538 = vmatpush3.bf16.msra.mxu0 %v1537_v37  ;;  %v1551_v13 = vpack.c.bf16 %v783_v11, %v782_v10  ;;  %v766_v14 = vld [vmem:[#allocation8 + $0x50] sm:$0xff]  ;;  %v771_v33 = vld [vmem:[#allocation8 + $0x78] sm:$0xff] }
 0x197   :  { %1572 = vmatprep.subr.bf16.mxu1 %v1571_v43  ;;  %1540 = vmatprep.subr.bf16.mxu0 %v1539_v44  ;;  %v786_v26 = vld [vmem:[#allocation8 + $0xf0] sm:$0xff] }
 0x198   :  { %562 = vmatmul.mubr.f32.gmra.mrb[12].mxu0 %v429_v15  ;;  %v767_v15 = vld [vmem:[#allocation8 + $0x58] sm:$0xff]  ;;  %v1559_v30 = vpack.c.bf16 %v787_v27, %v786_v26  ;;  %v770_v32 = vld [vmem:[#allocation8 + $0x70] sm:$0xff] }
 0x199   :  { %566 = vmatprep.mubr.f32.mxu0 %v434_v16  ;;  %v1553_v16 = vpack.c.bf16 %v767_v15, %v766_v14  ;;  %v1561_v36 = vpack.c.bf16 %v771_v33, %v770_v32  ;;  %v689_v32 = vld [vmem:[%s2008_s6] sm:$0x1] }
 0x19a   :  { %1574 = vmatpush3.bf16.msra.mxu1 %v1571_v43  ;;  %1542 = vmatpush3.bf16.msra.mxu0 %v1541_v49 }
 0x19b   :  { %1576 = vmatprep.subr.bf16.mxu1 %v1575_v56  ;;  %1544 = vmatprep.subr.bf16.mxu0 %v1543_v57 }
 0x19c   :  { %567 = vmatmul.mubr.f32.gmra.mrb[14].mxu0 %v430_v17  ;;  %v800_v17 = vld [vmem:[#allocation8 + $0x160] sm:$0xff] }
 0x19d   :  { %v1587_v21 = vpack.c.bf16 %v801_v18, %v800_v17 }
 0x19e   :  { %1578 = vmatpush3.bf16.msra.mxu1 %v1575_v56  ;;  %1546 = vmatpush3.bf16.msra.mxu0 %v1545_v60 }
 0x19f   :  { %1580 = vmatprep.subr.bf16.mxu1 %v1579_v3  ;;  %1548 = vmatprep.subr.bf16.mxu0 %v1547_v4 }
 0x1a2   :  { %1582 = vmatpush3.bf16.msra.mxu1 %v1579_v3  ;;  %1550 = vmatpush3.bf16.msra.mxu0 %v1549_v7 }
 0x1a3   :  { %1584 = vmatprep.subr.bf16.mxu1 %v1583_v12  ;;  %1552 = vmatprep.subr.bf16.mxu0 %v1551_v13 }
 0x1a6   :  { %1586 = vmatpush3.bf16.msra.mxu1 %v1583_v12  ;;  %1554 = vmatpush3.bf16.msra.mxu0 %v1553_v16 }
 0x1a7   :  { %1588 = vmatprep.subr.bf16.mxu1 %v1587_v21  ;;  %1556 = vmatprep.subr.bf16.mxu0 %v1555_v22 }
 0x1aa   :  { %1590 = vmatpush3.bf16.msra.mxu1 %v1587_v21  ;;  %1558 = vmatpush3.bf16.msra.mxu0 %v1557_v25 }
 0x1ab   :  { %1560 = vmatprep.subr.bf16.mxu0 %v1559_v30  ;;  %1592 = vmatprep.subr.bf16.mxu1 %v1591_v34 }
 0x1ae   :  { %1594 = vmatpush3.bf16.msra.mxu1 %v1591_v34  ;;  %1562 = vmatpush3.bf16.msra.mxu0 %v1561_v36  ;;  %v691_v36 = vld [vmem:[%s2009_s7] sm:$0x1] }
 0x263   :  { %v1193_v37 = vpop.f32.mrb[8].mxu0  ;;  %v1361_v38 = vpop.f32.mrb[4].mxu1 }
 0x264   :  { %v1194_v39 = vpop.f32.mrb[9].mxu0  ;;  %v638_v41 = vpop.f32.mrb[5].mxu1 }
 0x265   :  { %v1195_v42 = vadd.f32 %v1194_v39, %v1193_v37 }
 0x267   :  { %v639_v43 = vadd.f32 %v1195_v42, %v638_v41  ;;  %v1196_v44 = vpop.f32.mrb[10].mxu0  ;;  %v1364_v45 = vpop.f32.mrb[6].mxu1 }
 0x268   :  { %v1197_v48 = vpop.f32.mrb[11].mxu0  ;;  %v648_v49 = vpop.f32.mrb[7].mxu1 }
 0x269   :  { %v1198_v50 = vadd.f32 %v1197_v48, %v1196_v44  ;;  %v657_v51 = vmul.f32 %v639_v43, %v1921_v35 }
 0x26b   :  { %v644_v53 = vadd.f32 %v1361_v38, %v1198_v50  ;;  %v1199_v55 = vpop.f32.mrb[12].mxu0  ;;  %v670_v59 = vmul.f32 %v657_v51, %v657_v51 }
 0x26c   :  { %v1200_v56 = vpop.f32.mrb[13].mxu0 }
 0x26d   :  { %v658_v57 = vmul.f32 %v644_v53, %v1925_v46  ;;  %v1201_v58 = vadd.f32 %v1200_v56, %v1199_v55 }
 0x26f   :  { %v661_v60 = vadd.f32 %v658_v57, %v657_v51  ;;  %v671_v61 = vmul.f32 %v658_v57, %v658_v57  ;;  %v649_v62 = vadd.f32 %v1201_v58, %v648_v49  ;;  %v1202_v1 = vpop.f32.mrb[14].mxu0 }
 0x270   :  { %v1203_v2 = vpop.f32.mrb[15].mxu0 }
 0x271   :  { %v674_v3 = vadd.f32 %v671_v61, %v670_v59  ;;  %v659_v4 = vmul.f32 %v649_v62, %v1931_v52  ;;  %v1204_v5 = vadd.f32 %v1203_v2, %v1202_v1 }
 0x273   :  { %v662_v6 = vadd.f32 %v661_v60, %v659_v4  ;;  %v672_v7 = vmul.f32 %v659_v4, %v659_v4  ;;  %v654_v8 = vadd.f32 %v1364_v45, %v1204_v5 }
 0x275   :  { %v675_v9 = vadd.f32 %v674_v3, %v672_v7  ;;  %v660_v10 = vmul.f32 %v654_v8, %v1941_v0 }
 0x277   :  { %v663_v11 = vadd.f32 %v662_v6, %v660_v10  ;;  %v673_v12 = vmul.f32 %v660_v10, %v660_v10 }
 0x279   :  { %v664_v13 = vrot.slane %v663_v11, 4  ;;  %v676_v14 = vadd.f32 %v675_v9, %v673_v12 }
 0x27b   :  { %v665_v15 = vadd.f32 %v664_v13, %v663_v11  ;;  %v677_v16 = vrot.slane %v676_v14, 4 }
 0x27d   :  { %v666_v17 = vrot.slane %v665_v15, 2  ;;  %v678_v18 = vadd.f32 %v677_v16, %v676_v14 }
 0x27f   :  { %v667_v19 = vadd.f32 %v666_v17, %v665_v15  ;;  %v679_v20 = vrot.slane %v678_v18, 2 }
 0x281   :  { %v668_v21 = vrot.slane %v667_v19, 1  ;;  %v680_v22 = vadd.f32 %v679_v20, %v678_v18 }
 0x283   :  { %v669_v23 = vadd.f32 %v668_v21, %v667_v19  ;;  %v681_v24 = vrot.slane %v680_v22, 1 }
 0x285   :  { %v682_v25 = vadd.f32 %v681_v24, %v680_v22  ;;  %v683_v26 = vmul.f32 0.035714287, %v669_v23 }
 0x287   :  { %v684_v27 = vmul.f32 0.035714287, %v682_v25  ;;  %v685_v29 = vmul.f32 %v683_v26, %v683_v26 }
 0x289   :  { %v686_v30 = vsub.f32 %v684_v27, %v685_v29 }
 0x28b   :  { %v687_v31 = vadd.f32 1e-05, %v686_v30 }
 0x28d   :  { %1623 = vrsqrt.f32 %v687_v31 }
 0x297   :  { %v1624_v33 = vpop.eup %1623 }
 0x298   :  { %v690_v34 = vmul.f32 %v1624_v33, %v689_v32 }
 0x29a   :  { %v692_v37 = vmul.f32 %v690_v34, %v683_v26  ;;  %v697_v38 = vrot.slane %v690_v34, %v1948_v28 }
 0x29c   :  { %v693_v39 = vsub.f32 %v691_v36, %v692_v37  ;;  %v698_v41 = vmul.f32 %v697_v38, %v639_v43  ;;  %v699_v42 = vmul.f32 %v697_v38, %v644_v53  ;;  %v700_v44 = vmul.f32 %v697_v38, %v649_v62 }
 0x29d   :  { %v701_v45 = vmul.f32 %v697_v38, %v654_v8 }
 0x29e   :  { %v706_v48 = vrot.slane %v693_v39, %v1948_v28 }
 0x2a0   :  { %v708_v49 = vadd.f32 %v706_v48, %v698_v41  ;;  %v709_v50 = vadd.f32 %v706_v48, %v699_v42  ;;  %v710_v51 = vadd.f32 %v706_v48, %v700_v44  ;;  %v711_v55 = vadd.f32 %v706_v48, %v701_v45 }
 0x2a2   :  { %v1089_v56 = vmul.f32 -1.442695, %v708_v49  ;;  %v1090_v57 = vmul.f32 -1.442695, %v709_v50  ;;  %v1091_v58 = vmul.f32 -1.442695, %v710_v51 }
 0x2a3   :  { %v1092_v59 = vmul.f32 -1.442695, %v711_v55 }
 0x2a4   :  { %1625 = vpow2.f32 %v1089_v56 }
 0x2a5   :  { %1627 = vpow2.f32 %v1090_v57 }
 0x2a6   :  { %1629 = vpow2.f32 %v1091_v58 }
 0x2a7   :  { %1631 = vpow2.f32 %v1092_v59 }
 0x2ae   :  { %v1626_v60 = vpop.eup %1625 }
 0x2af   :  { %v1628_v61 = vpop.eup %1627  ;;  %v724_v43 = vadd.f32 1.0, %v1626_v60 }
 0x2b0   :  { %v1630_v53 = vpop.eup %1629  ;;  %v725_v62 = vadd.f32 1.0, %v1628_v61 }
 0x2b1   :  { %v1632_v1 = vpop.eup %1631  ;;  %v726_v2 = vadd.f32 1.0, %v1630_v53  ;;  %1633 = vrcp.f32 %v724_v43 }
 0x2b2   :  { %v727_v3 = vadd.f32 1.0, %v1632_v1  ;;  %1635 = vrcp.f32 %v725_v62 }
 0x2b3   :  { %1637 = vrcp.f32 %v726_v2 }
 0x2b4   :  { %1639 = vrcp.f32 %v727_v3 }
 0x2bb   :  { %v1634_v4 = vpop.eup %1633 }
 0x2bc   :  { %v1636_v5 = vpop.eup %1635  ;;  %v736_v6 = vmul.f32 %v1634_v4, %v708_v49 }
 0x2bd   :  { %v1638_v7 = vpop.eup %1637  ;;  %v737_v8 = vmul.f32 %v1636_v5, %v709_v50 }
 0x2be   :  { %v1640_v9 = vpop.eup %1639  ;;  %v738_v10 = vmul.f32 %v1638_v7, %v710_v51  ;;  %740 = vst [vmem:[#allocation2 + $0x2] sm:$0xff] %v736_v6  ;;  %1397 = vmatprep.mubr.f32.mxu1 %v736_v6 }
 0x2bf   :  { %v739_v11 = vmul.f32 %v1640_v9, %v711_v55  ;;  %741 = vst [vmem:[#allocation2 + $0xa] sm:$0x3f] %v737_v8 }
 0x2c0   :  { %742 = vst [vmem:[#allocation2 + $0x1a] sm:$0xff] %v738_v10 }
 0x2c1   :  { %743 = vst [vmem:[#allocation2 + $0x22] sm:$0x3f] %v739_v11 }
 0x2c5   :  { %v748_v12 = vld [vmem:[#allocation2 + $0x1] sm:$0xff] }
 0x2c6   :  { %v744_v13 = vld [vmem:[#allocation2] sm:$0xff]  ;;  %868 = vmatprep.mubr.f32.mxu0 %v748_v12  ;;  %v753_v14 = vld [vmem:[#allocation2 + $0xa] sm:$0xff] }
 0x2c7   :  { %869 = vmatmul.mubr.f32.vlgmr.msra.gmra.mrb[16].mxu0 %v744_v13  ;;  %1398 = vmatmul.mubr.f32.vlgmr.msra.gmra.mrb[8].mxu1 %v753_v14  ;;  %v749_v15 = vld [vmem:[#allocation2 + $0x9] sm:$0xff]  ;;  %v750_v18 = vld [vmem:[#allocation2 + $0x19] sm:$0xff] }
 0x2c8   :  { %873 = vmatprep.mubr.f32.mxu0 %v749_v15  ;;  %1400 = vmatprep.mubr.f32.mxu1 %v738_v10  ;;  %v745_v16 = vld [vmem:[#allocation2 + $0x8] sm:$0xff]  ;;  %v746_v19 = vld [vmem:[#allocation2 + $0x18] sm:$0xff]  ;;  %v747_v21 = vld [vmem:[#allocation2 + $0x20] sm:$0xff] }
 0x2c9   :  { %v755_v17 = vld [vmem:[#allocation2 + $0x22] sm:$0xff]  ;;  %v1010_v14 = vld [vmem:[%s2010_s8] sm:$0x1]  ;;  %s1760_s8 = smov [#allocation9]  }
 0x2ca   :  { %v751_v20 = vld [vmem:[#allocation2 + $0x21] sm:$0xff] }
 0x2cb   :  { %874 = vmatmul.mubr.f32.gmra.mrb[18].mxu0 %v745_v16  ;;  %1401 = vmatmul.mubr.f32.gmra.mrb[10].mxu1 %v755_v17  ;;  %v1012_v17 = vld [vmem:[%s2011_s9] sm:$0x1]  ;;  %s1072_s9 = sshll.u32 %s1760_s8, 4  ;;  %s1073_s9 = int_to_ptr.vmem [resolvable:$true] %s1072_s9 }
 0x2cc   :  { %878 = vmatprep.mubr.f32.mxu0 %v750_v18  ;;  %s1725_s16 = scalar_lea.vmem %s1073_s9, 512  ;;  %p1730_p11 = scmp.lt.s32.totalorder %s1073_s9, %s1073_s9 }
 0x2cd   :  { %p1726_p10 = scmp.ne.s32.totalorder %s1073_s9, %s1725_s16  ;;  %p1731_p12 = scmp.lt.s32.totalorder %s1725_s16, %s1725_s16 }
 0x2cf   :  { %879 = vmatmul.mubr.f32.gmra.mrb[20].mxu0 %v746_v19  ;;  %p1732_p13 = por %p1731_p12, %p1730_p11 }
 0x2d0   :  { %883 = vmatprep.mubr.f32.mxu0 %v751_v20 }
 0x2d1   :  { %p1733_p0 = pnand %p1732_p13, %p1726_p10 }
 0x2d3   :  { %884 = vmatmul.mubr.f32.gmra.mrb[22].mxu0 %v747_v21 }
 0x39a   :  { %v1257_v22 = vpop.f32.mrb[16].mxu0  ;;  %v1399_v23 = vpop.f32.mrb[8].mxu1 }
 0x39b   :  { %v1258_v24 = vpop.f32.mrb[17].mxu0  ;;  %v955_v25 = vpop.f32.mrb[9].mxu1 }
 0x39c   :  { %v1259_v26 = vadd.f32 %v1258_v24, %v1257_v22 }
 0x39e   :  { %v956_v27 = vadd.f32 %v1259_v26, %v955_v25  ;;  %v1260_v29 = vpop.f32.mrb[18].mxu0  ;;  %v1402_v30 = vpop.f32.mrb[10].mxu1 }
 0x39f   :  { %v1261_v31 = vpop.f32.mrb[19].mxu0  ;;  %v965_v32 = vpop.f32.mrb[11].mxu1 }
 0x3a0   :  { %v974_v33 = vadd.f32 %v956_v27, %v1923_v40  ;;  %v1262_v34 = vadd.f32 %v1261_v31, %v1260_v29 }
 0x3a2   :  { %v961_v36 = vadd.f32 %v1399_v23, %v1262_v34  ;;  %v1263_v37 = vpop.f32.mrb[20].mxu0  ;;  %v978_v38 = vmul.f32 %v974_v33, %v1921_v35 }
 0x3a3   :  { %v1264_v39 = vpop.f32.mrb[21].mxu0 }
 0x3a4   :  { %v975_v41 = vadd.f32 %v961_v36, %v1927_v47  ;;  %v1265_v42 = vadd.f32 %v1264_v39, %v1263_v37  ;;  %v991_v49 = vmul.f32 %v978_v38, %v978_v38 }
 0x3a6   :  { %v979_v44 = vmul.f32 %v975_v41, %v1925_v46  ;;  %v966_v45 = vadd.f32 %v1265_v42, %v965_v32  ;;  %v1266_v48 = vpop.f32.mrb[22].mxu0 }
 0x3a7   :  { %v1267_v50 = vpop.f32.mrb[23].mxu0 }
 0x3a8   :  { %v982_v51 = vadd.f32 %v979_v44, %v978_v38  ;;  %v992_v55 = vmul.f32 %v979_v44, %v979_v44  ;;  %v976_v56 = vadd.f32 %v966_v45, %v1935_v54  ;;  %v1268_v40 = vadd.f32 %v1267_v50, %v1266_v48 }
 0x3aa   :  { %v995_v57 = vadd.f32 %v992_v55, %v991_v49  ;;  %v980_v58 = vmul.f32 %v976_v56, %v1931_v52  ;;  %v971_v59 = vadd.f32 %v1402_v30, %v1268_v40 }
 0x3ac   :  { %v983_v35 = vadd.f32 %v982_v51, %v980_v58  ;;  %v993_v60 = vmul.f32 %v980_v58, %v980_v58  ;;  %v977_v47 = vadd.f32 %v971_v59, %v1939_v63 }
 0x3ae   :  { %v996_v61 = vadd.f32 %v995_v57, %v993_v60  ;;  %v981_v46 = vmul.f32 %v977_v47, %v1941_v0 }
 0x3b0   :  { %v984_v43 = vadd.f32 %v983_v35, %v981_v46  ;;  %v994_v53 = vmul.f32 %v981_v46, %v981_v46 }
 0x3b2   :  { %v985_v62 = vrot.slane %v984_v43, 4  ;;  %v997_v1 = vadd.f32 %v996_v61, %v994_v53 }
 0x3b4   :  { %v986_v2 = vadd.f32 %v985_v62, %v984_v43  ;;  %v998_v3 = vrot.slane %v997_v1, 4 }
 0x3b6   :  { %v987_v4 = vrot.slane %v986_v2, 2  ;;  %v999_v54 = vadd.f32 %v998_v3, %v997_v1 }
 0x3b8   :  { %v988_v5 = vadd.f32 %v987_v4, %v986_v2  ;;  %v1000_v6 = vrot.slane %v999_v54, 2 }
 0x3ba   :  { %v989_v7 = vrot.slane %v988_v5, 1  ;;  %v1001_v52 = vadd.f32 %v1000_v6, %v999_v54 }
 0x3bc   :  { %v990_v8 = vadd.f32 %v989_v7, %v988_v5  ;;  %v1002_v9 = vrot.slane %v1001_v52, 1 }
 0x3be   :  { %v1003_v10 = vadd.f32 %v1002_v9, %v1001_v52  ;;  %v1004_v11 = vmul.f32 0.035714287, %v990_v8 }
 0x3c0   :  { %v1005_v63 = vmul.f32 0.035714287, %v1003_v10  ;;  %v1006_v12 = vmul.f32 %v1004_v11, %v1004_v11 }
 0x3c2   :  { %v1007_v13 = vsub.f32 %v1005_v63, %v1006_v12 }
 0x3c4   :  { %v1008_v0 = vadd.f32 1e-05, %v1007_v13 }
 0x3c6   :  { %1641 = vrsqrt.f32 %v1008_v0 }
 0x3d0   :  { %v1642_v15 = vpop.eup %1641 }
 0x3d1   :  { %v1011_v16 = vmul.f32 %v1642_v15, %v1010_v14 }
 0x3d3   :  { %v1013_v18 = vmul.f32 %v1011_v16, %v1004_v11  ;;  %v1018_v19 = vrot.slane %v1011_v16, %v1948_v28 }
 0x3d5   :  { %v1014_v20 = vsub.f32 %v1012_v17, %v1013_v18  ;;  %v1022_v21 = vmul.f32 %v1018_v19, %v977_v47  ;;  %v1019_v22 = vmul.f32 %v1018_v19, %v974_v33  ;;  %v1020_v23 = vmul.f32 %v1018_v19, %v975_v41 }
 0x3d6   :  { %v1021_v24 = vmul.f32 %v1018_v19, %v976_v56 }
 0x3d7   :  { %v1027_v25 = vrot.slane %v1014_v20, %v1948_v28 }
 0x3d9   :  { %v1032_v26 = vadd.f32 %v1027_v25, %v1022_v21  ;;  %v1029_v27 = vadd.f32 %v1027_v25, %v1019_v22  ;;  %v1030_v29 = vadd.f32 %v1027_v25, %v1020_v23  ;;  %v1031_v30 = vadd.f32 %v1027_v25, %v1021_v24 }
 0x3db   :  { %v1096_v31 = vmul.f32 -1.442695, %v1032_v26  ;;  %v1093_v32 = vmul.f32 -1.442695, %v1029_v27  ;;  %v1094_v34 = vmul.f32 -1.442695, %v1030_v29 }
 0x3dc   :  { %v1095_v36 = vmul.f32 -1.442695, %v1031_v30 }
 0x3dd   :  { %1643 = vpow2.f32 %v1096_v31 }
 0x3de   :  { %1645 = vpow2.f32 %v1093_v32 }
 0x3df   :  { %1647 = vpow2.f32 %v1094_v34 }
 0x3e0   :  { %1649 = vpow2.f32 %v1095_v36 }
 0x3e7   :  { %v1644_v37 = vpop.eup %1643 }
 0x3e8   :  { %v1646_v38 = vpop.eup %1645  ;;  %v1048_v39 = vadd.f32 1.0, %v1644_v37 }
 0x3e9   :  { %v1648_v33 = vpop.eup %1647  ;;  %v1045_v41 = vadd.f32 1.0, %v1646_v38 }
 0x3ea   :  { %v1650_v42 = vpop.eup %1649  ;;  %1651 = vrcp.f32 %v1048_v39  ;;  %v1046_v28 = vadd.f32 1.0, %v1648_v33 }
 0x3eb   :  { %v1047_v44 = vadd.f32 1.0, %v1650_v42  ;;  %1653 = vrcp.f32 %v1045_v41 }
 0x3ec   :  { %1655 = vrcp.f32 %v1046_v28 }
 0x3ed   :  { %1657 = vrcp.f32 %v1047_v44 }
 0x3f4   :  { %v1652_v45 = vpop.eup %1651 }
 0x3f5   :  { %v1654_v48 = vpop.eup %1653  ;;  %v1060_v49 = vmul.f32 %v1652_v45, %v1032_v26 }
 0x3f6   :  { %v1656_v50 = vpop.eup %1655  ;;  %v1057_v51 = vmul.f32 %v1654_v48, %v1029_v27 }
 0x3f7   :  { %v1658_v55 = vpop.eup %1657  ;;  %1066 = vst [vmem:[#allocation9 + $0x1a] sm:$0x3f] %v1060_v49  ;;  %v1058_v56 = vmul.f32 %v1656_v50, %v1030_v29 }
 0x3f8   :  { %v1059_v40 = vmul.f32 %v1658_v55, %v1031_v30  ;;  %1063 = vst [vmem:[#allocation9 + $0x2] sm:$0xff] %v1057_v51 }
 0x3f9   :  { %1064 = vst [vmem:[#allocation9 + $0xa] sm:$0x3f] %v1058_v56 }
 0x3fa   :  { %1065 = vst [vmem:[#allocation9 + $0x12] sm:$0xff] %v1059_v40 }
 0x3fb   :  { %1736 = shalt.err (!%p1733_p0)
}
 0x3fc   :  { %s1737_s3 = scalar_lea.hbm %s2013_s11, 512 }
 0x3fd   :  { %p1738_p1 = scmp.ne.s32.totalorder %s2013_s11, %s1737_s3  ;;  %p1741_p2 = scmp.lt.u32.totalorder %s1737_s3, %s2013_s11 }
 0x3ff   :  { %p1743_p3 = pnand %p1741_p2, %p1738_p1 }
 0x401   :  { %1746 = shalt.err (!%p1743_p3)
}
 0x402   :  { %1078 = dma.vmem_to_hbm [thread:$0]  %s1073_s9, 512, %s2013_s11, [#allocation5], %s1755_s29, %s1755_s29, %s1756_s30  }
 0x403   :  { %1751 = dma.done.wait [#allocation5], 512  }
 0x404   :  { %1752 = vsyncadd [#allocation5], 4294966784 }
 0x405   :  { %1082 = vsyncpa [#allocation4], 1 }
 0x406   :  { %1083 = vsyncpa [#allocation7], 1 }
 0x407   :  { %1084 = vsyncpa [#allocation5], 1 }

</bundles_post_ra>
